<compile_context>
chip_gen: v6e
topology: v6e:2x2x1
jax: 0.10.0
libtpu: 0.0.40
codegen_flags: <defaults>
</compile_context>

<pallas_src>
import functools
import math

import jax
import jax.numpy as jnp
from jax import lax
from jax.experimental import pallas as pl
from jax.experimental.pallas import tpu as pltpu

# ---------------------------------------------------------------------------
# Small demo configuration, consistent with the module's constructor:
#   Transformer_Encoder(args, input_dim=256, output_dim=64, seq_len=4, n_head=4)
# ---------------------------------------------------------------------------
INPUT_DIM = 256
OUTPUT_DIM = 64
SEQ_LEN = 4
N_HEAD = 4
REDUCE_RATE = INPUT_DIM // OUTPUT_DIM          # 4
D_IN = INPUT_DIM // SEQ_LEN                    # 64  per-position input width
D_RED = D_IN // REDUCE_RATE                    # 16  per-position q/k/v width
D_TENSOR = D_RED // N_HEAD                     # 4   per-head width
HIDDEN = OUTPUT_DIM * 2                        # 128 (layermul = 2)
LN_EPS = 1e-5                                  # nn.LayerNorm default
TILE_ROWS = 1024                               # batch*neg rows per grid step


# ---------------------------------------------------------------------------
# Fused Pallas kernel
# ---------------------------------------------------------------------------
def _encoder_kernel(x_ref, wqkv_ref, bqkv_ref, red_ref, exp_ref,
                    w1_ref, b1_ref, g1_ref, be1_ref,
                    wf1_ref, bf1_ref, wf2_ref, bf2_ref, g2_ref, be2_ref,
                    o_ref, *, seq_len, n_head, d_tensor):
    S = seq_len
    P = seq_len * n_head * d_tensor              # 64: flat q/k/v width
    bf16 = jnp.bfloat16

    x = x_ref[...]                               # (T, input_dim) bf16

    # Fused projection: columns = [ Q | K rolled by t=0..S-1 | V rolled t=0..S-1 ].
    # Column layout inside every P-wide group is  s*R + h*D + d  (matches the
    # PyTorch split()/concat()); the "roll" (key position j = (s+t) mod S) is
    # baked into the weights in prepare_params, so no in-kernel relayout.
    qkv = jnp.dot(x, wqkv_ref[...], preferred_element_type=jnp.float32)
    qkv = qkv + bqkv_ref[...]                    # (T, (1+2S)*P) f32

    qf = qkv[:, :P]                              # (T, 64)

    # scores_t[:, s*H + h] = (1/sqrt(D)) * sum_d q[s,h,d] * k[(s+t)%S, h, d]
    # via a constant (P, S*H) reduce matmul (scale folded into red_ref).
    scores = []
    for t in range(S):
        kt = qkv[:, (1 + t) * P:(2 + t) * P]                       # (T, 64)
        prod = (qf * kt).astype(bf16)
        scores.append(jnp.dot(prod, red_ref[...],
                              preferred_element_type=jnp.float32))  # (T, 16)

    # Softmax over the S key offsets (elementwise across the S (T,16) tensors).
    m = scores[0]
    for t in range(1, S):
        m = jnp.maximum(m, scores[t])
    es = [jnp.exp(s - m) for s in scores]
    denom = es[0]
    for t in range(1, S):
        denom = denom + es[t]
    inv = pl.reciprocal(denom, approx=True)       # (T, 16), EUP slot

    # Expand probabilities back to (T, 64) with a constant (16, 64) matmul and
    # accumulate against the matching pre-rolled V lanes.
    attn = None
    for t in range(S):
        p = (es[t] * inv).astype(bf16)                              # (T, 16)
        p64 = jnp.dot(p, exp_ref[...],
                      preferred_element_type=jnp.float32)           # (T, 64)
        vt = qkv[:, (1 + S + t) * P:(2 + S + t) * P]                # (T, 64)
        contrib = p64 * vt
        attn = contrib if attn is None else attn + contrib

    # fc1 with the MHA residual folded into the weight: w1 = fc1_w.T + I.
    mha = jnp.dot(attn.astype(bf16), w1_ref[...],
                  preferred_element_type=jnp.float32) + b1_ref[...]

    # LayerNorm1 (var = E[x^2] - mu^2 so the two cross-lane reduces overlap).
    mu = jnp.mean(mha, axis=-1, keepdims=True)
    ms = jnp.mean(mha * mha, axis=-1, keepdims=True)
    h1 = (mha - mu) * lax.rsqrt(ms - mu * mu + LN_EPS) * g1_ref[...] + be1_ref[...]

    # Position-wise feed-forward + residual.
    # TODO(synk): dropout is only active in train mode; eval-mode identity here.
    f = jnp.dot(h1.astype(bf16), wf1_ref[...],
                preferred_element_type=jnp.float32) + bf1_ref[...]
    f = jnp.maximum(f, 0.0)
    f = jnp.dot(f.astype(bf16), wf2_ref[...],
                preferred_element_type=jnp.float32) + bf2_ref[...]
    y = h1 + f

    # LayerNorm2
    mu2 = jnp.mean(y, axis=-1, keepdims=True)
    ms2 = jnp.mean(y * y, axis=-1, keepdims=True)
    o_ref[...] = (y - mu2) * lax.rsqrt(ms2 - mu2 * mu2 + LN_EPS) * g2_ref[...] + be2_ref[...]


# ---------------------------------------------------------------------------
# One-time parameter folding (hoisted out of the per-call path)
# ---------------------------------------------------------------------------
def prepare_params(p, *, seq_len=SEQ_LEN, n_head=N_HEAD):
    f32, bf16 = jnp.float32, jnp.bfloat16
    d_red, d_in = p['wq'].shape                     # (16, 64) torch Linear weight
    d_tensor = d_red // n_head
    out_dim = seq_len * d_red                       # 64
    scale = 1.0 / math.sqrt(d_tensor)

    eye_s = jnp.eye(seq_len, dtype=f32)

    def block_diag(w):                              # fold per-position Linear
        return jnp.kron(eye_s, w.T.astype(f32))     # (seq*d_in, seq*d_red)

    def tiled_bias(b):
        return jnp.tile(b.astype(f32), seq_len)     # (seq*d_red,)

    wq_f, wk_f, wv_f = block_diag(p['wq']), block_diag(p['wk']), block_diag(p['wv'])
    bq_f, bk_f, bv_f = tiled_bias(p['bq']), tiled_bias(p['bk']), tiled_bias(p['bv'])

    # Pre-rolled K / V projections: in the t-th copy, column s*d_red + c holds
    # the projection of key/value position (s+t) % seq_len.  This bakes the
    # attention's lane rotations into the (once-per-model) weight prep.
    k_cols = [jnp.roll(wk_f, -d_red * t, axis=1) for t in range(seq_len)]
    v_cols = [jnp.roll(wv_f, -d_red * t, axis=1) for t in range(seq_len)]
    bk_cols = [jnp.roll(bk_f, -d_red * t) for t in range(seq_len)]
    bv_cols = [jnp.roll(bv_f, -d_red * t) for t in range(seq_len)]

    wqkv = jnp.concatenate([wq_f] + k_cols + v_cols, axis=1)       # (d_in*S, 9*64)
    bqkv = jnp.concatenate([bq_f] + bk_cols + bv_cols)[None, :]    # (1, 9*64)

    # Constant group-of-d_tensor reduce (scores, with 1/sqrt(d) folded in) and
    # expand (probabilities) matrices for the lane-packed attention.
    idx = jnp.arange(out_dim)
    cols = (idx // d_red) * n_head + (idx % d_red) // d_tensor
    red = jax.nn.one_hot(cols, seq_len * n_head, dtype=f32) * scale  # (64, 16)
    expm = (red.T > 0).astype(f32)                                   # (16, 64)

    # Fold the MHA residual into fc1:  attn @ (W.T + I) + b == attn @ W.T + b + attn
    w1 = p['fc1_w'].T.astype(f32) + jnp.eye(out_dim, dtype=f32)

    return {
        # matmul weights -> bf16 (native MXU rate), accumulation stays f32
        'wqkv': wqkv.astype(bf16), 'bqkv': bqkv.astype(f32),
        'red': red.astype(bf16), 'expm': expm.astype(bf16),
        'w1': w1.astype(bf16), 'b1': p['fc1_b'].astype(f32)[None, :],
        'g1': p['ln1_g'].astype(f32)[None, :], 'be1': p['ln1_b'].astype(f32)[None, :],
        'wf1': p['pff1_w'].T.astype(bf16), 'bf1': p['pff1_b'].astype(f32)[None, :],
        'wf2': p['pff2_w'].T.astype(bf16), 'bf2': p['pff2_b'].astype(f32)[None, :],
        'g2': p['ln2_g'].astype(f32)[None, :], 'be2': p['ln2_b'].astype(f32)[None, :],
    }


# ---------------------------------------------------------------------------
# Forward wrapper
# ---------------------------------------------------------------------------
def _round_up(v, m):
    return -(-v // m) * m


def _pick_tile(n, tile_rows):
    if n >= 2 * tile_rows:
        return tile_rows
    # Keep >= 2 grid steps whenever possible so v7x's two TensorCores both get
    # work; round to a multiple of 16 so bf16 (16,128)-tiled blocks stay legal.
    return max(16, _round_up(_round_up(n, 2) // 2, 16))


def transformer_encoder_forward(x, prep, *, seq_len=SEQ_LEN, n_head=N_HEAD,
                                tile_rows=TILE_ROWS):
    batch, neg, input_dim = x.shape
    n = batch * neg
    out_dim = prep['w1'].shape[0]
    d_red = out_dim // seq_len
    d_tensor = d_red // n_head

    xf = x.reshape(n, input_dim).astype(jnp.bfloat16)   # halves the input DMA

    tile = _pick_tile(n, tile_rows)
    num_tiles = pl.cdiv(n, tile)
    n_pad = num_tiles * tile
    if n_pad != n:
        xf = jnp.pad(xf, ((0, n_pad - n), (0, 0)))      # zero rows are LN/softmax-safe

    names = ('wqkv', 'bqkv', 'red', 'expm', 'w1', 'b1', 'g1', 'be1',
             'wf1', 'bf1', 'wf2', 'bf2', 'g2', 'be2')
    weights = [prep[k] for k in names]

    kernel = functools.partial(_encoder_kernel, seq_len=seq_len,
                               n_head=n_head, d_tensor=d_tensor)

    out = pl.pallas_call(
        kernel,
        out_shape=jax.ShapeDtypeStruct((n_pad, out_dim), jnp.float32),
        grid=(num_tiles,),
        in_specs=[pl.BlockSpec((tile, input_dim), lambda i: (i, 0))] +
                 [pl.BlockSpec(w.shape, lambda i: (0, 0)) for w in weights],
        out_specs=pl.BlockSpec((tile, out_dim), lambda i: (i, 0)),
        compiler_params=pltpu.CompilerParams(
            dimension_semantics=("parallel",),
            vmem_limit_bytes=32 * 1024 * 1024),   # headroom over v5e's 16 MiB default
    )(xf, *weights)

    return out[:n].reshape(batch, neg, out_dim)


# ---------------------------------------------------------------------------
# Pure-JAX reference (mirrors the PyTorch eval-mode forward, all f32)
# ---------------------------------------------------------------------------
def reference_forward(x, p):
    batch, neg, _ = x.shape
    n = batch * neg
    t = x.reshape(n, SEQ_LEN, D_IN)

    q = t @ p['wq'].T + p['bq']
    k = t @ p['wk'].T + p['bk']
    v = t @ p['wv'].T + p['bv']

    def split(z):
        return z.reshape(n, SEQ_LEN, N_HEAD, D_TENSOR).transpose(0, 2, 1, 3)

    q, k, v = split(q), split(k), split(v)
    scores = jnp.matmul(q, jnp.swapaxes(k, -1, -2)) / math.sqrt(D_TENSOR)
    attn_w = jax.nn.softmax(scores, axis=-1)
    sa = jnp.matmul(attn_w, v)                                   # (n, H, S, D)

    concat = sa.transpose(0, 2, 1, 3).reshape(batch, neg, OUTPUT_DIM)
    mha = concat @ p['fc1_w'].T + p['fc1_b'] + concat

    def layer_norm(z, g, b):
        mu = z.mean(-1, keepdims=True)
        var = ((z - mu) ** 2).mean(-1, keepdims=True)
        return (z - mu) / jnp.sqrt(var + LN_EPS) * g + b

    h = layer_norm(mha, p['ln1_g'], p['ln1_b'])
    f = jnp.maximum(h @ p['pff1_w'].T + p['pff1_b'], 0.0)        # dropout = id (eval)
    f = f @ p['pff2_w'].T + p['pff2_b']
    return layer_norm(h + f, p['ln2_g'], p['ln2_b'])


def init_params(key):
    ks = jax.random.split(key, 16)
    f32 = jnp.float32

    def w(k, shape, s=0.1):
        return s * jax.random.normal(k, shape, f32)

    return {
        'wq': w(ks[0], (D_RED, D_IN)), 'bq': w(ks[1], (D_RED,)),
        'wk': w(ks[2], (D_RED, D_IN)), 'bk': w(ks[3], (D_RED,)),
        'wv': w(ks[4], (D_RED, D_IN)), 'bv': w(ks[5], (D_RED,)),
        'fc1_w': w(ks[6], (OUTPUT_DIM, OUTPUT_DIM)), 'fc1_b': w(ks[7], (OUTPUT_DIM,)),
        'ln1_g': 1.0 + w(ks[8], (OUTPUT_DIM,)), 'ln1_b': w(ks[9], (OUTPUT_DIM,)),
        'pff1_w': w(ks[10], (HIDDEN, OUTPUT_DIM)), 'pff1_b': w(ks[11], (HIDDEN,)),
        'pff2_w': w(ks[12], (OUTPUT_DIM, HIDDEN)), 'pff2_b': w(ks[13], (OUTPUT_DIM,)),
        'ln2_g': 1.0 + w(ks[14], (OUTPUT_DIM,)), 'ln2_b': w(ks[15], (OUTPUT_DIM,)),
    }


if __name__ == "__main__":
    key = jax.random.PRNGKey(0)
    k_params, k_x = jax.random.split(key)
    params = init_params(k_params)

    batch, neg_sampling = 2, 4
    # obj_embedding: (batch, neg_sampling, input_dim)
    x = jax.random.normal(k_x, (batch, neg_sampling, INPUT_DIM), jnp.float32)

    prep = prepare_params(params)                       # amortized once
    fwd = jax.jit(transformer_encoder_forward)
    out = fwd(x, prep)
    jax.block_until_ready(out)

    ref = reference_forward(x, params)
    assert out.shape == (batch, neg_sampling, OUTPUT_DIM)
    # bf16 MXU inputs + f32 accumulation vs. an all-f32 reference: allow a
    # slightly looser absolute tolerance than the pure-f32 variant.
    max_err = float(jnp.max(jnp.abs(out - ref)))
    assert max_err < 5e-2, max_err

    print("KERNEL_OK")
</pallas_src>

<mosaic_0001>
module attributes {stable_mosaic.version = 11 : i64} {
  func.func @_encoder_kernel(%arg0: i32, %arg1: memref<16x256xbf16, #tpu.memory_space<vmem>>, %arg2: memref<256x576xbf16, #tpu.memory_space<vmem>>, %arg3: memref<1x576xf32, #tpu.memory_space<vmem>>, %arg4: memref<64x16xbf16, #tpu.memory_space<vmem>>, %arg5: memref<16x64xbf16, #tpu.memory_space<vmem>>, %arg6: memref<64x64xbf16, #tpu.memory_space<vmem>>, %arg7: memref<1x64xf32, #tpu.memory_space<vmem>>, %arg8: memref<1x64xf32, #tpu.memory_space<vmem>>, %arg9: memref<1x64xf32, #tpu.memory_space<vmem>>, %arg10: memref<64x128xbf16, #tpu.memory_space<vmem>>, %arg11: memref<1x128xf32, #tpu.memory_space<vmem>>, %arg12: memref<128x64xbf16, #tpu.memory_space<vmem>>, %arg13: memref<1x64xf32, #tpu.memory_space<vmem>>, %arg14: memref<1x64xf32, #tpu.memory_space<vmem>>, %arg15: memref<1x64xf32, #tpu.memory_space<vmem>>, %arg16: memref<16x64xf32, #tpu.memory_space<vmem>>) attributes {dimension_semantics = [#tpu.dimension_semantics<parallel>], iteration_bounds = array<i64: 1>, scalar_prefetch = 0 : i64, scratch_operands = 0 : i64, tpu.core_type = #tpu.core_type<tc>, window_params = [{transform_indices = @transform_0, window_bounds = array<i64: 16, 256>}, {pipeline_mode = #tpu.pipeline_mode<synchronous>, transform_indices = @transform_1, window_bounds = array<i64: 256, 576>}, {pipeline_mode = #tpu.pipeline_mode<synchronous>, transform_indices = @transform_2, window_bounds = array<i64: 1, 576>}, {pipeline_mode = #tpu.pipeline_mode<synchronous>, transform_indices = @transform_3, window_bounds = array<i64: 64, 16>}, {pipeline_mode = #tpu.pipeline_mode<synchronous>, transform_indices = @transform_4, window_bounds = array<i64: 16, 64>}, {pipeline_mode = #tpu.pipeline_mode<synchronous>, transform_indices = @transform_5, window_bounds = array<i64: 64, 64>}, {pipeline_mode = #tpu.pipeline_mode<synchronous>, transform_indices = @transform_6, window_bounds = array<i64: 1, 64>}, {pipeline_mode = #tpu.pipeline_mode<synchronous>, transform_indices = @transform_7, window_bounds = array<i64: 1, 64>}, {pipeline_mode = #tpu.pipeline_mode<synchronous>, transform_indices = @transform_8, window_bounds = array<i64: 1, 64>}, {pipeline_mode = #tpu.pipeline_mode<synchronous>, transform_indices = @transform_9, window_bounds = array<i64: 64, 128>}, {pipeline_mode = #tpu.pipeline_mode<synchronous>, transform_indices = @transform_10, window_bounds = array<i64: 1, 128>}, {pipeline_mode = #tpu.pipeline_mode<synchronous>, transform_indices = @transform_11, window_bounds = array<i64: 128, 64>}, {pipeline_mode = #tpu.pipeline_mode<synchronous>, transform_indices = @transform_12, window_bounds = array<i64: 1, 64>}, {pipeline_mode = #tpu.pipeline_mode<synchronous>, transform_indices = @transform_13, window_bounds = array<i64: 1, 64>}, {pipeline_mode = #tpu.pipeline_mode<synchronous>, transform_indices = @transform_14, window_bounds = array<i64: 1, 64>}, {transform_indices = @transform_15, window_bounds = array<i64: 16, 64>}]} {
    %c0 = arith.constant 0 : index
    %c0_0 = arith.constant 0 : index
    %0 = vector.load %arg1[%c0, %c0_0] : memref<16x256xbf16, #tpu.memory_space<vmem>>, vector<16x256xbf16>
    %c0_1 = arith.constant 0 : index
    %c0_2 = arith.constant 0 : index
    %1 = vector.load %arg2[%c0_1, %c0_2] : memref<256x576xbf16, #tpu.memory_space<vmem>>, vector<256x576xbf16>
    %cst = arith.constant dense<0.000000e+00> : vector<16x576xf32>
    %2 = tpu.matmul %0, %1, %cst {dimension_numbers = #tpu.dot_dimension_numbers<[1], [0], [0], [1], [0, 0, 1, 1], [], []>} : vector<16x256xbf16>, vector<256x576xbf16>, vector<16x576xf32> -> vector<16x576xf32>
    %c0_3 = arith.constant 0 : index
    %c0_4 = arith.constant 0 : index
    %3 = vector.load %arg3[%c0_3, %c0_4] : memref<1x576xf32, #tpu.memory_space<vmem>>, vector<1x576xf32>
    %4 = vector.broadcast %3 : vector<1x576xf32> to vector<16x576xf32>
    %5 = arith.addf %2, %4 : vector<16x576xf32>
    %6 = vector.extract_strided_slice %5 {offsets = [0, 0], sizes = [16, 64], strides = [1, 1]} : vector<16x576xf32> to vector<16x64xf32>
    %7 = vector.extract_strided_slice %5 {offsets = [0, 64], sizes = [16, 64], strides = [1, 1]} : vector<16x576xf32> to vector<16x64xf32>
    %8 = arith.mulf %6, %7 : vector<16x64xf32>
    %9 = arith.truncf %8 : vector<16x64xf32> to vector<16x64xbf16>
    %c0_5 = arith.constant 0 : index
    %c0_6 = arith.constant 0 : index
    %10 = vector.load %arg4[%c0_5, %c0_6] : memref<64x16xbf16, #tpu.memory_space<vmem>>, vector<64x16xbf16>
    %cst_7 = arith.constant dense<0.000000e+00> : vector<16x16xf32>
    %11 = tpu.matmul %9, %10, %cst_7 {dimension_numbers = #tpu.dot_dimension_numbers<[1], [0], [0], [1], [0, 0, 1, 1], [], []>} : vector<16x64xbf16>, vector<64x16xbf16>, vector<16x16xf32> -> vector<16x16xf32>
    %12 = vector.extract_strided_slice %5 {offsets = [0, 128], sizes = [16, 64], strides = [1, 1]} : vector<16x576xf32> to vector<16x64xf32>
    %13 = arith.mulf %6, %12 : vector<16x64xf32>
    %14 = arith.truncf %13 : vector<16x64xf32> to vector<16x64xbf16>
    %c0_8 = arith.constant 0 : index
    %c0_9 = arith.constant 0 : index
    %15 = vector.load %arg4[%c0_8, %c0_9] : memref<64x16xbf16, #tpu.memory_space<vmem>>, vector<64x16xbf16>
    %cst_10 = arith.constant dense<0.000000e+00> : vector<16x16xf32>
    %16 = tpu.matmul %14, %15, %cst_10 {dimension_numbers = #tpu.dot_dimension_numbers<[1], [0], [0], [1], [0, 0, 1, 1], [], []>} : vector<16x64xbf16>, vector<64x16xbf16>, vector<16x16xf32> -> vector<16x16xf32>
    %17 = vector.extract_strided_slice %5 {offsets = [0, 192], sizes = [16, 64], strides = [1, 1]} : vector<16x576xf32> to vector<16x64xf32>
    %18 = arith.mulf %6, %17 : vector<16x64xf32>
    %19 = arith.truncf %18 : vector<16x64xf32> to vector<16x64xbf16>
    %c0_11 = arith.constant 0 : index
    %c0_12 = arith.constant 0 : index
    %20 = vector.load %arg4[%c0_11, %c0_12] : memref<64x16xbf16, #tpu.memory_space<vmem>>, vector<64x16xbf16>
    %cst_13 = arith.constant dense<0.000000e+00> : vector<16x16xf32>
    %21 = tpu.matmul %19, %20, %cst_13 {dimension_numbers = #tpu.dot_dimension_numbers<[1], [0], [0], [1], [0, 0, 1, 1], [], []>} : vector<16x64xbf16>, vector<64x16xbf16>, vector<16x16xf32> -> vector<16x16xf32>
    %22 = vector.extract_strided_slice %5 {offsets = [0, 256], sizes = [16, 64], strides = [1, 1]} : vector<16x576xf32> to vector<16x64xf32>
    %23 = arith.mulf %6, %22 : vector<16x64xf32>
    %24 = arith.truncf %23 : vector<16x64xf32> to vector<16x64xbf16>
    %c0_14 = arith.constant 0 : index
    %c0_15 = arith.constant 0 : index
    %25 = vector.load %arg4[%c0_14, %c0_15] : memref<64x16xbf16, #tpu.memory_space<vmem>>, vector<64x16xbf16>
    %cst_16 = arith.constant dense<0.000000e+00> : vector<16x16xf32>
    %26 = tpu.matmul %24, %25, %cst_16 {dimension_numbers = #tpu.dot_dimension_numbers<[1], [0], [0], [1], [0, 0, 1, 1], [], []>} : vector<16x64xbf16>, vector<64x16xbf16>, vector<16x16xf32> -> vector<16x16xf32>
    %27 = arith.maximumf %11, %16 : vector<16x16xf32>
    %28 = arith.maximumf %27, %21 : vector<16x16xf32>
    %29 = arith.maximumf %28, %26 : vector<16x16xf32>
    %30 = arith.subf %11, %29 : vector<16x16xf32>
    %31 = math.exp %30 : vector<16x16xf32>
    %32 = arith.subf %16, %29 : vector<16x16xf32>
    %33 = math.exp %32 : vector<16x16xf32>
    %34 = arith.subf %21, %29 : vector<16x16xf32>
    %35 = math.exp %34 : vector<16x16xf32>
    %36 = arith.subf %26, %29 : vector<16x16xf32>
    %37 = math.exp %36 : vector<16x16xf32>
    %38 = arith.addf %31, %33 : vector<16x16xf32>
    %39 = arith.addf %38, %35 : vector<16x16xf32>
    %40 = arith.addf %39, %37 : vector<16x16xf32>
    %41 = tpu.reciprocal %40 {approx = true} : vector<16x16xf32> -> vector<16x16xf32>
    %42 = arith.mulf %31, %41 : vector<16x16xf32>
    %43 = arith.truncf %42 : vector<16x16xf32> to vector<16x16xbf16>
    %c0_17 = arith.constant 0 : index
    %c0_18 = arith.constant 0 : index
    %44 = vector.load %arg5[%c0_17, %c0_18] : memref<16x64xbf16, #tpu.memory_space<vmem>>, vector<16x64xbf16>
    %cst_19 = arith.constant dense<0.000000e+00> : vector<16x64xf32>
    %45 = tpu.matmul %43, %44, %cst_19 {dimension_numbers = #tpu.dot_dimension_numbers<[1], [0], [0], [1], [0, 0, 1, 1], [], []>} : vector<16x16xbf16>, vector<16x64xbf16>, vector<16x64xf32> -> vector<16x64xf32>
    %46 = vector.extract_strided_slice %5 {offsets = [0, 320], sizes = [16, 64], strides = [1, 1]} : vector<16x576xf32> to vector<16x64xf32>
    %47 = arith.mulf %45, %46 : vector<16x64xf32>
    %48 = arith.mulf %33, %41 : vector<16x16xf32>
    %49 = arith.truncf %48 : vector<16x16xf32> to vector<16x16xbf16>
    %c0_20 = arith.constant 0 : index
    %c0_21 = arith.constant 0 : index
    %50 = vector.load %arg5[%c0_20, %c0_21] : memref<16x64xbf16, #tpu.memory_space<vmem>>, vector<16x64xbf16>
    %cst_22 = arith.constant dense<0.000000e+00> : vector<16x64xf32>
    %51 = tpu.matmul %49, %50, %cst_22 {dimension_numbers = #tpu.dot_dimension_numbers<[1], [0], [0], [1], [0, 0, 1, 1], [], []>} : vector<16x16xbf16>, vector<16x64xbf16>, vector<16x64xf32> -> vector<16x64xf32>
    %52 = vector.extract_strided_slice %5 {offsets = [0, 384], sizes = [16, 64], strides = [1, 1]} : vector<16x576xf32> to vector<16x64xf32>
    %53 = arith.mulf %51, %52 : vector<16x64xf32>
    %54 = arith.addf %47, %53 : vector<16x64xf32>
    %55 = arith.mulf %35, %41 : vector<16x16xf32>
    %56 = arith.truncf %55 : vector<16x16xf32> to vector<16x16xbf16>
    %c0_23 = arith.constant 0 : index
    %c0_24 = arith.constant 0 : index
    %57 = vector.load %arg5[%c0_23, %c0_24] : memref<16x64xbf16, #tpu.memory_space<vmem>>, vector<16x64xbf16>
    %cst_25 = arith.constant dense<0.000000e+00> : vector<16x64xf32>
    %58 = tpu.matmul %56, %57, %cst_25 {dimension_numbers = #tpu.dot_dimension_numbers<[1], [0], [0], [1], [0, 0, 1, 1], [], []>} : vector<16x16xbf16>, vector<16x64xbf16>, vector<16x64xf32> -> vector<16x64xf32>
    %59 = vector.extract_strided_slice %5 {offsets = [0, 448], sizes = [16, 64], strides = [1, 1]} : vector<16x576xf32> to vector<16x64xf32>
    %60 = arith.mulf %58, %59 : vector<16x64xf32>
    %61 = arith.addf %54, %60 : vector<16x64xf32>
    %62 = arith.mulf %37, %41 : vector<16x16xf32>
    %63 = arith.truncf %62 : vector<16x16xf32> to vector<16x16xbf16>
    %c0_26 = arith.constant 0 : index
    %c0_27 = arith.constant 0 : index
    %64 = vector.load %arg5[%c0_26, %c0_27] : memref<16x64xbf16, #tpu.memory_space<vmem>>, vector<16x64xbf16>
    %cst_28 = arith.constant dense<0.000000e+00> : vector<16x64xf32>
    %65 = tpu.matmul %63, %64, %cst_28 {dimension_numbers = #tpu.dot_dimension_numbers<[1], [0], [0], [1], [0, 0, 1, 1], [], []>} : vector<16x16xbf16>, vector<16x64xbf16>, vector<16x64xf32> -> vector<16x64xf32>
    %66 = vector.extract_strided_slice %5 {offsets = [0, 512], sizes = [16, 64], strides = [1, 1]} : vector<16x576xf32> to vector<16x64xf32>
    %67 = arith.mulf %65, %66 : vector<16x64xf32>
    %68 = arith.addf %61, %67 : vector<16x64xf32>
    %69 = arith.truncf %68 : vector<16x64xf32> to vector<16x64xbf16>
    %c0_29 = arith.constant 0 : index
    %c0_30 = arith.constant 0 : index
    %70 = vector.load %arg6[%c0_29, %c0_30] : memref<64x64xbf16, #tpu.memory_space<vmem>>, vector<64x64xbf16>
    %cst_31 = arith.constant dense<0.000000e+00> : vector<16x64xf32>
    %71 = tpu.matmul %69, %70, %cst_31 {dimension_numbers = #tpu.dot_dimension_numbers<[1], [0], [0], [1], [0, 0, 1, 1], [], []>} : vector<16x64xbf16>, vector<64x64xbf16>, vector<16x64xf32> -> vector<16x64xf32>
    %c0_32 = arith.constant 0 : index
    %c0_33 = arith.constant 0 : index
    %72 = vector.load %arg7[%c0_32, %c0_33] : memref<1x64xf32, #tpu.memory_space<vmem>>, vector<1x64xf32>
    %73 = vector.broadcast %72 : vector<1x64xf32> to vector<16x64xf32>
    %74 = arith.addf %71, %73 : vector<16x64xf32>
    %cst_34 = arith.constant dense<0.000000e+00> : vector<16xf32>
    %75 = vector.multi_reduction <add>, %74, %cst_34 [1] : vector<16x64xf32> to vector<16xf32>
    %76 = vector.shape_cast %75 : vector<16xf32> to vector<16x1xf32>
    %cst_35 = arith.constant 6.400000e+01 : f32
    %77 = vector.broadcast %cst_35 : f32 to vector<16x1xf32>
    %78 = arith.divf %76, %77 : vector<16x1xf32>
    %79 = arith.mulf %74, %74 : vector<16x64xf32>
    %cst_36 = arith.constant dense<0.000000e+00> : vector<16xf32>
    %80 = vector.multi_reduction <add>, %79, %cst_36 [1] : vector<16x64xf32> to vector<16xf32>
    %81 = vector.shape_cast %80 : vector<16xf32> to vector<16x1xf32>
    %cst_37 = arith.constant 6.400000e+01 : f32
    %82 = vector.broadcast %cst_37 : f32 to vector<16x1xf32>
    %83 = arith.divf %81, %82 : vector<16x1xf32>
    %84 = vector.broadcast %78 : vector<16x1xf32> to vector<16x64xf32>
    %85 = arith.subf %74, %84 : vector<16x64xf32>
    %86 = arith.mulf %78, %78 : vector<16x1xf32>
    %87 = arith.subf %83, %86 : vector<16x1xf32>
    %cst_38 = arith.constant 9.99999974E-6 : f32
    %88 = vector.broadcast %cst_38 : f32 to vector<16x1xf32>
    %89 = arith.addf %87, %88 : vector<16x1xf32>
    %90 = math.rsqrt %89 : vector<16x1xf32>
    %91 = vector.broadcast %90 : vector<16x1xf32> to vector<16x64xf32>
    %92 = arith.mulf %85, %91 : vector<16x64xf32>
    %c0_39 = arith.constant 0 : index
    %c0_40 = arith.constant 0 : index
    %93 = vector.load %arg8[%c0_39, %c0_40] : memref<1x64xf32, #tpu.memory_space<vmem>>, vector<1x64xf32>
    %94 = vector.broadcast %93 : vector<1x64xf32> to vector<16x64xf32>
    %95 = arith.mulf %92, %94 : vector<16x64xf32>
    %c0_41 = arith.constant 0 : index
    %c0_42 = arith.constant 0 : index
    %96 = vector.load %arg9[%c0_41, %c0_42] : memref<1x64xf32, #tpu.memory_space<vmem>>, vector<1x64xf32>
    %97 = vector.broadcast %96 : vector<1x64xf32> to vector<16x64xf32>
    %98 = arith.addf %95, %97 : vector<16x64xf32>
    %99 = arith.truncf %98 : vector<16x64xf32> to vector<16x64xbf16>
    %c0_43 = arith.constant 0 : index
    %c0_44 = arith.constant 0 : index
    %100 = vector.load %arg10[%c0_43, %c0_44] : memref<64x128xbf16, #tpu.memory_space<vmem>>, vector<64x128xbf16>
    %cst_45 = arith.constant dense<0.000000e+00> : vector<16x128xf32>
    %101 = tpu.matmul %99, %100, %cst_45 {dimension_numbers = #tpu.dot_dimension_numbers<[1], [0], [0], [1], [0, 0, 1, 1], [], []>} : vector<16x64xbf16>, vector<64x128xbf16>, vector<16x128xf32> -> vector<16x128xf32>
    %c0_46 = arith.constant 0 : index
    %c0_47 = arith.constant 0 : index
    %102 = vector.load %arg11[%c0_46, %c0_47] : memref<1x128xf32, #tpu.memory_space<vmem>>, vector<1x128xf32>
    %103 = vector.broadcast %102 : vector<1x128xf32> to vector<16x128xf32>
    %104 = arith.addf %101, %103 : vector<16x128xf32>
    %cst_48 = arith.constant 0.000000e+00 : f32
    %105 = vector.broadcast %cst_48 : f32 to vector<16x128xf32>
    %106 = arith.maximumf %104, %105 : vector<16x128xf32>
    %107 = arith.truncf %106 : vector<16x128xf32> to vector<16x128xbf16>
    %c0_49 = arith.constant 0 : index
    %c0_50 = arith.constant 0 : index
    %108 = vector.load %arg12[%c0_49, %c0_50] : memref<128x64xbf16, #tpu.memory_space<vmem>>, vector<128x64xbf16>
    %cst_51 = arith.constant dense<0.000000e+00> : vector<16x64xf32>
    %109 = tpu.matmul %107, %108, %cst_51 {dimension_numbers = #tpu.dot_dimension_numbers<[1], [0], [0], [1], [0, 0, 1, 1], [], []>} : vector<16x128xbf16>, vector<128x64xbf16>, vector<16x64xf32> -> vector<16x64xf32>
    %c0_52 = arith.constant 0 : index
    %c0_53 = arith.constant 0 : index
    %110 = vector.load %arg13[%c0_52, %c0_53] : memref<1x64xf32, #tpu.memory_space<vmem>>, vector<1x64xf32>
    %111 = vector.broadcast %110 : vector<1x64xf32> to vector<16x64xf32>
    %112 = arith.addf %109, %111 : vector<16x64xf32>
    %113 = arith.addf %98, %112 : vector<16x64xf32>
    %cst_54 = arith.constant dense<0.000000e+00> : vector<16xf32>
    %114 = vector.multi_reduction <add>, %113, %cst_54 [1] : vector<16x64xf32> to vector<16xf32>
    %115 = vector.shape_cast %114 : vector<16xf32> to vector<16x1xf32>
    %cst_55 = arith.constant 6.400000e+01 : f32
    %116 = vector.broadcast %cst_55 : f32 to vector<16x1xf32>
    %117 = arith.divf %115, %116 : vector<16x1xf32>
    %118 = arith.mulf %113, %113 : vector<16x64xf32>
    %cst_56 = arith.constant dense<0.000000e+00> : vector<16xf32>
    %119 = vector.multi_reduction <add>, %118, %cst_56 [1] : vector<16x64xf32> to vector<16xf32>
    %120 = vector.shape_cast %119 : vector<16xf32> to vector<16x1xf32>
    %cst_57 = arith.constant 6.400000e+01 : f32
    %121 = vector.broadcast %cst_57 : f32 to vector<16x1xf32>
    %122 = arith.divf %120, %121 : vector<16x1xf32>
    %123 = vector.broadcast %117 : vector<16x1xf32> to vector<16x64xf32>
    %124 = arith.subf %113, %123 : vector<16x64xf32>
    %125 = arith.mulf %117, %117 : vector<16x1xf32>
    %126 = arith.subf %122, %125 : vector<16x1xf32>
    %cst_58 = arith.constant 9.99999974E-6 : f32
    %127 = vector.broadcast %cst_58 : f32 to vector<16x1xf32>
    %128 = arith.addf %126, %127 : vector<16x1xf32>
    %129 = math.rsqrt %128 : vector<16x1xf32>
    %130 = vector.broadcast %129 : vector<16x1xf32> to vector<16x64xf32>
    %131 = arith.mulf %124, %130 : vector<16x64xf32>
    %c0_59 = arith.constant 0 : index
    %c0_60 = arith.constant 0 : index
    %132 = vector.load %arg14[%c0_59, %c0_60] : memref<1x64xf32, #tpu.memory_space<vmem>>, vector<1x64xf32>
    %133 = vector.broadcast %132 : vector<1x64xf32> to vector<16x64xf32>
    %134 = arith.mulf %131, %133 : vector<16x64xf32>
    %c0_61 = arith.constant 0 : index
    %c0_62 = arith.constant 0 : index
    %135 = vector.load %arg15[%c0_61, %c0_62] : memref<1x64xf32, #tpu.memory_space<vmem>>, vector<1x64xf32>
    %136 = vector.broadcast %135 : vector<1x64xf32> to vector<16x64xf32>
    %137 = arith.addf %134, %136 : vector<16x64xf32>
    %c0_63 = arith.constant 0 : index
    %c0_64 = arith.constant 0 : index
    %138 = vector.load %arg16[%c0_63, %c0_64] : memref<16x64xf32, #tpu.memory_space<vmem>>, vector<16x64xf32>
    tpu.vector_store %arg16[%c0_63, %c0_64], %137 {strides = array<i32>} : memref<16x64xf32, #tpu.memory_space<vmem>>, vector<16x64xf32>,
    return
  }
  func.func @transform_0(%arg0: i32) -> (i32, i32) {
    %c0_i32 = arith.constant 0 : i32
    %c0_i32_0 = arith.constant 0 : i32
    return %arg0, %c0_i32 : i32, i32
  }
  func.func @transform_1(%arg0: i32) -> (i32, i32) {
    %c0_i32 = arith.constant 0 : i32
    %c0_i32_0 = arith.constant 0 : i32
    %c0_i32_1 = arith.constant 0 : i32
    return %c0_i32, %c0_i32_0 : i32, i32
  }
  func.func @transform_2(%arg0: i32) -> (i32, i32) {
    %c0_i32 = arith.constant 0 : i32
    %c0_i32_0 = arith.constant 0 : i32
    %c0_i32_1 = arith.constant 0 : i32
    return %c0_i32, %c0_i32_0 : i32, i32
  }
  func.func @transform_3(%arg0: i32) -> (i32, i32) {
    %c0_i32 = arith.constant 0 : i32
    %c0_i32_0 = arith.constant 0 : i32
    %c0_i32_1 = arith.constant 0 : i32
    return %c0_i32, %c0_i32_0 : i32, i32
  }
  func.func @transform_4(%arg0: i32) -> (i32, i32) {
    %c0_i32 = arith.constant 0 : i32
    %c0_i32_0 = arith.constant 0 : i32
    %c0_i32_1 = arith.constant 0 : i32
    return %c0_i32, %c0_i32_0 : i32, i32
  }
  func.func @transform_5(%arg0: i32) -> (i32, i32) {
    %c0_i32 = arith.constant 0 : i32
    %c0_i32_0 = arith.constant 0 : i32
    %c0_i32_1 = arith.constant 0 : i32
    return %c0_i32, %c0_i32_0 : i32, i32
  }
  func.func @transform_6(%arg0: i32) -> (i32, i32) {
    %c0_i32 = arith.constant 0 : i32
    %c0_i32_0 = arith.constant 0 : i32
    %c0_i32_1 = arith.constant 0 : i32
    return %c0_i32, %c0_i32_0 : i32, i32
  }
  func.func @transform_7(%arg0: i32) -> (i32, i32) {
    %c0_i32 = arith.constant 0 : i32
    %c0_i32_0 = arith.constant 0 : i32
    %c0_i32_1 = arith.constant 0 : i32
    return %c0_i32, %c0_i32_0 : i32, i32
  }
  func.func @transform_8(%arg0: i32) -> (i32, i32) {
    %c0_i32 = arith.constant 0 : i32
    %c0_i32_0 = arith.constant 0 : i32
    %c0_i32_1 = arith.constant 0 : i32
    return %c0_i32, %c0_i32_0 : i32, i32
  }
  func.func @transform_9(%arg0: i32) -> (i32, i32) {
    %c0_i32 = arith.constant 0 : i32
    %c0_i32_0 = arith.constant 0 : i32
    %c0_i32_1 = arith.constant 0 : i32
    return %c0_i32, %c0_i32_0 : i32, i32
  }
  func.func @transform_10(%arg0: i32) -> (i32, i32) {
    %c0_i32 = arith.constant 0 : i32
    %c0_i32_0 = arith.constant 0 : i32
    %c0_i32_1 = arith.constant 0 : i32
    return %c0_i32, %c0_i32_0 : i32, i32
  }
  func.func @transform_11(%arg0: i32) -> (i32, i32) {
    %c0_i32 = arith.constant 0 : i32
    %c0_i32_0 = arith.constant 0 : i32
    %c0_i32_1 = arith.constant 0 : i32
    return %c0_i32, %c0_i32_0 : i32, i32
  }
  func.func @transform_12(%arg0: i32) -> (i32, i32) {
    %c0_i32 = arith.constant 0 : i32
    %c0_i32_0 = arith.constant 0 : i32
    %c0_i32_1 = arith.constant 0 : i32
    return %c0_i32, %c0_i32_0 : i32, i32
  }
  func.func @transform_13(%arg0: i32) -> (i32, i32) {
    %c0_i32 = arith.constant 0 : i32
    %c0_i32_0 = arith.constant 0 : i32
    %c0_i32_1 = arith.constant 0 : i32
    return %c0_i32, %c0_i32_0 : i32, i32
  }
  func.func @transform_14(%arg0: i32) -> (i32, i32) {
    %c0_i32 = arith.constant 0 : i32
    %c0_i32_0 = arith.constant 0 : i32
    %c0_i32_1 = arith.constant 0 : i32
    return %c0_i32, %c0_i32_0 : i32, i32
  }
  func.func @transform_15(%arg0: i32) -> (i32, i32) {
    %c0_i32 = arith.constant 0 : i32
    %c0_i32_0 = arith.constant 0 : i32
    return %arg0, %c0_i32 : i32, i32
  }
}

</mosaic_0001>

<bundles_post_ra>
// kernel: transformer_encoder_forward.1
= control target key start
LH: loop header
LB: loop body
LE: loop exit
PB: predicated region body
PF: predicated region fallthrough
CT: control target
= control target key end

     0   :  { %vm2092_vm0 = vmmov 0   ;;  %vm772_vm1 = vcmask 523264   ;;  %vm1015_vm2 = vcmask 130048   ;;  %s2654_s1 = inlined_call_operand.vmem [shape: bf16[256,576], index: 1, kind: input, shape index: {}]   ;;  %s2655_s0 = inlined_call_operand.vmem [shape: bf16[16,256], index: 0, kind: input, shape index: {}]   ;;  %s2656_s3 = inlined_call_operand.vmem [shape: bf16[64,16], index: 3, kind: input, shape index: {}]   ;;  %s2657_s2 = inlined_call_operand.vmem [shape: f32[1,576], index: 2, kind: input, shape index: {}]   ;;  %s2658_s4 = inlined_call_operand.vmem [shape: bf16[16,64], index: 4, kind: input, shape index: {}]   ;;  %s2659_s5 = inlined_call_operand.vmem [shape: bf16[64,64], index: 5, kind: input, shape index: {}]   ;;  %s2660_s6 = inlined_call_operand.vmem [shape: f32[1,64], index: 6, kind: input, shape index: {}]   ;;  %s2661_s9 = inlined_call_operand.vmem [shape: bf16[64,128], index: 9, kind: input, shape index: {}]   ;;  %s2662_s11 = inlined_call_operand.vmem [shape: bf16[128,64], index: 11, kind: input, shape index: {}]   ;;  %s2663_s7 = inlined_call_operand.vmem [shape: f32[1,64], index: 7, kind: input, shape index: {}]   ;;  %s2664_s8 = inlined_call_operand.vmem [shape: f32[1,64], index: 8, kind: input, shape index: {}]   ;;  %s2665_s10 = inlined_call_operand.vmem [shape: f32[1,128], index: 10, kind: input, shape index: {}]   ;;  %s2666_s12 = inlined_call_operand.vmem [shape: f32[1,64], index: 12, kind: input, shape index: {}]   ;;  %s2667_s13 = inlined_call_operand.vmem [shape: f32[1,64], index: 13, kind: input, shape index: {}]   ;;  %s2668_s14 = inlined_call_operand.vmem [shape: f32[1,64], index: 14, kind: input, shape index: {}]   ;;  %s2669_s15 = inlined_call_operand.vmem [shape: f32[16,64], index: 15, kind: output, shape index: {}]  }
   0x1   :  { %v1927_v0 = vld [vmem:[%s2654_s1 + $0x11c] ss:$20 sps:$4 sm:$0xff]   ;;  %v1929_v1 = vld [vmem:[%s2654_s1 + $0x124] ss:$20 sps:$4 sm:$0xff]   ;;  %v1932_v3 = vld [vmem:[%s2654_s1 + $0x120] ss:$20 sps:$4 sm:$0xff]  }
   0x2   :  { %602 = vmatprep.subr.bf16.mxu0 %v1927_v0  ;;  %v1931_v2 = vld [vmem:[%s2654_s1 + $0x118] ss:$20 sps:$4 sm:$0xff]   ;;  %645 = vmatprep.subr.bf16.mxu1 %v1929_v1  ;;  %v1933_v4 = vld [vmem:[%s2654_s1 + $0xf4] ss:$20 sps:$4 sm:$0xff]   ;;  %v1935_v5 = vld [vmem:[%s2654_s1 + $0xfc] ss:$20 sps:$4 sm:$0xff]  }
   0x3   :  { %603 = vmatpush1.bf16.msra.mxu0 %v1931_v2  ;;  %646 = vmatpush1.bf16.msra.mxu1 %v1932_v3  ;;  %v1937_v6 = vld [vmem:[%s2654_s1 + $0xf0] ss:$20 sps:$4 sm:$0xff]   ;;  %v1938_v7 = vld [vmem:[%s2654_s1 + $0xf8] ss:$20 sps:$4 sm:$0xff]   ;;  %v1941_v9 = vld [vmem:[%s2654_s1 + $0xd4] ss:$20 sps:$4 sm:$0xff]  }
   0x4   :  { %604 = vmatprep.subr.bf16.mxu0 %v1933_v4  ;;  %647 = vmatprep.subr.bf16.mxu1 %v1935_v5  ;;  %v1939_v8 = vld [vmem:[%s2654_s1 + $0xcc] ss:$20 sps:$4 sm:$0xff]   ;;  %v1943_v10 = vld [vmem:[%s2654_s1 + $0xc8] ss:$20 sps:$4 sm:$0xff]   ;;  %v1944_v11 = vld [vmem:[%s2654_s1 + $0xd0] ss:$20 sps:$4 sm:$0xff]   ;;  %v151_v5 = vlaneseq }
   0x5   :  { %v1945_v12 = vld [vmem:[%s2654_s1 + $0xa4] ss:$20 sps:$4 sm:$0xff]   ;;  %v1947_v13 = vld [vmem:[%s2654_s1 + $0xac] ss:$20 sps:$4 sm:$0xff]   ;;  %v1950_v15 = vld [vmem:[%s2654_s1 + $0xa8] ss:$20 sps:$4 sm:$0xff]  }
   0x6   :  { %v1949_v14 = vld [vmem:[%s2654_s1 + $0xa0] ss:$20 sps:$4 sm:$0xff]   ;;  %v1951_v16 = vld [vmem:[%s2654_s1 + $0x7c] ss:$20 sps:$4 sm:$0xff]   ;;  %v1953_v17 = vld [vmem:[%s2654_s1 + $0x84] ss:$20 sps:$4 sm:$0xff]  }
   0x7   :  { %605 = vmatpush1.bf16.msra.mxu0 %v1937_v6  ;;  %648 = vmatpush1.bf16.msra.mxu1 %v1938_v7  ;;  %v1955_v18 = vld [vmem:[%s2654_s1 + $0x78] ss:$20 sps:$4 sm:$0xff]   ;;  %v1956_v19 = vld [vmem:[%s2654_s1 + $0x80] ss:$20 sps:$4 sm:$0xff]   ;;  %v1959_v21 = vld [vmem:[%s2654_s1 + $0x5c] ss:$20 sps:$4 sm:$0xff]  }
   0x8   :  { %606 = vmatprep.subr.bf16.mxu0 %v1939_v8  ;;  %649 = vmatprep.subr.bf16.mxu1 %v1941_v9  ;;  %v1957_v20 = vld [vmem:[%s2654_s1 + $0x54] ss:$20 sps:$4 sm:$0xff]   ;;  %v1961_v22 = vld [vmem:[%s2654_s1 + $0x50] ss:$20 sps:$4 sm:$0xff]   ;;  %v1962_v23 = vld [vmem:[%s2654_s1 + $0x58] ss:$20 sps:$4 sm:$0xff]  }
   0x9   :  { %v1963_v24 = vld [vmem:[%s2654_s1 + $0x2c] ss:$20 sps:$4 sm:$0xff]   ;;  %v1965_v25 = vld [vmem:[%s2654_s1 + $0x34] ss:$20 sps:$4 sm:$0xff]   ;;  %v1968_v27 = vld [vmem:[%s2654_s1 + $0x30] ss:$20 sps:$4 sm:$0xff]  }
   0xa   :  { %v1967_v26 = vld [vmem:[%s2654_s1 + $0x28] ss:$20 sps:$4 sm:$0xff]   ;;  %v1969_v28 = vld [vmem:[%s2654_s1 + $0x4] ss:$20 sps:$4 sm:$0xff]   ;;  %v1971_v29 = vld [vmem:[%s2654_s1 + $0xc] ss:$20 sps:$4 sm:$0xff]  }
   0xb   :  { %607 = vmatpush1.bf16.msra.mxu0 %v1943_v10  ;;  %650 = vmatpush1.bf16.msra.mxu1 %v1944_v11  ;;  %v1973_v30 = vld [vmem:[%s2654_s1] ss:$20 sps:$4 sm:$0xff]   ;;  %v1974_v31 = vld [vmem:[%s2654_s1 + $0x8] ss:$20 sps:$4 sm:$0xff]   ;;  %v1977_v33 = vld [vmem:[%s2654_s1 + $0x264] ss:$20 sps:$4 sm:$0xff]  }
   0xc   :  { %608 = vmatprep.subr.bf16.mxu0 %v1945_v12  ;;  %651 = vmatprep.subr.bf16.mxu1 %v1947_v13  ;;  %v1975_v32 = vld [vmem:[%s2654_s1 + $0x25c] ss:$20 sps:$4 sm:$0xff]   ;;  %v1979_v34 = vld [vmem:[%s2654_s1 + $0x258] ss:$20 sps:$4 sm:$0xff]   ;;  %v1980_v35 = vld [vmem:[%s2654_s1 + $0x260] ss:$20 sps:$4 sm:$0xff]  }
   0xd   :  { %v1981_v36 = vld [vmem:[%s2654_s1 + $0x234] ss:$20 sps:$4 sm:$0xff]   ;;  %v1983_v37 = vld [vmem:[%s2654_s1 + $0x23c] ss:$20 sps:$4 sm:$0xff]   ;;  %v1986_v39 = vld [vmem:[%s2654_s1 + $0x238] ss:$20 sps:$4 sm:$0xff]  }
   0xe   :  { %v1985_v38 = vld [vmem:[%s2654_s1 + $0x230] ss:$20 sps:$4 sm:$0xff]   ;;  %v1987_v40 = vld [vmem:[%s2654_s1 + $0x20c] ss:$20 sps:$4 sm:$0xff]   ;;  %v1989_v41 = vld [vmem:[%s2654_s1 + $0x214] ss:$20 sps:$4 sm:$0xff]  }
   0xf   :  { %609 = vmatpush1.bf16.msra.mxu0 %v1949_v14  ;;  %652 = vmatpush1.bf16.msra.mxu1 %v1950_v15  ;;  %v1991_v42 = vld [vmem:[%s2654_s1 + $0x208] ss:$20 sps:$4 sm:$0xff]   ;;  %v1992_v43 = vld [vmem:[%s2654_s1 + $0x210] ss:$20 sps:$4 sm:$0xff]   ;;  %v1995_v45 = vld [vmem:[%s2654_s1 + $0x1ec] ss:$20 sps:$4 sm:$0xff]  }
  0x10   :  { %610 = vmatprep.subr.bf16.mxu0 %v1951_v16  ;;  %653 = vmatprep.subr.bf16.mxu1 %v1953_v17  ;;  %v1993_v44 = vld [vmem:[%s2654_s1 + $0x1e4] ss:$20 sps:$4 sm:$0xff]   ;;  %v1997_v46 = vld [vmem:[%s2654_s1 + $0x1e0] ss:$20 sps:$4 sm:$0xff]   ;;  %v1998_v47 = vld [vmem:[%s2654_s1 + $0x1e8] ss:$20 sps:$4 sm:$0xff]  }
  0x11   :  { %v1999_v48 = vld [vmem:[%s2654_s1 + $0x1bc] ss:$20 sps:$4 sm:$0xff]   ;;  %v2023_v49 = vld [vmem:[%s2655_s0 + $0x4] ss:$8 sps:$4 sm:$0xff]   ;;  %v2004_v52 = vld [vmem:[%s2654_s1 + $0x1c0] ss:$20 sps:$4 sm:$0xff]  }
  0x12   :  { %v2001_v50 = vld [vmem:[%s2654_s1 + $0x1c4] ss:$20 sps:$4 sm:$0xff]   ;;  %634 = vmatprep.mubr.bf16.mxu0 %v2023_v49  ;;  %677 = vmatprep.mubr.bf16.mxu1 %v2023_v49  ;;  %v2005_v53 = vld [vmem:[%s2654_s1 + $0x194] ss:$20 sps:$4 sm:$0xff]   ;;  %v2007_v54 = vld [vmem:[%s2654_s1 + $0x19c] ss:$20 sps:$4 sm:$0xff]  }
  0x13   :  { %611 = vmatpush1.bf16.msra.mxu0 %v1955_v18  ;;  %654 = vmatpush1.bf16.msra.mxu1 %v1956_v19  ;;  %v2003_v51 = vld [vmem:[%s2654_s1 + $0x1b8] ss:$20 sps:$4 sm:$0xff]   ;;  %v2009_v55 = vld [vmem:[%s2654_s1 + $0x190] ss:$20 sps:$4 sm:$0xff]   ;;  %v2013_v58 = vld [vmem:[%s2654_s1 + $0x174] ss:$20 sps:$4 sm:$0xff]  }
  0x14   :  { %612 = vmatprep.subr.bf16.mxu0 %v1957_v20  ;;  %655 = vmatprep.subr.bf16.mxu1 %v1959_v21  ;;  %v2010_v56 = vld [vmem:[%s2654_s1 + $0x198] ss:$20 sps:$4 sm:$0xff]   ;;  %v2015_v59 = vld [vmem:[%s2654_s1 + $0x168] ss:$20 sps:$4 sm:$0xff]   ;;  %v2016_v60 = vld [vmem:[%s2654_s1 + $0x170] ss:$20 sps:$4 sm:$0xff]  }
  0x15   :  { %v2011_v57 = vld [vmem:[%s2654_s1 + $0x16c] ss:$20 sps:$4 sm:$0xff]   ;;  %v2017_v61 = vld [vmem:[%s2654_s1 + $0x144] ss:$20 sps:$4 sm:$0xff]   ;;  %v2022_v0 = vld [vmem:[%s2654_s1 + $0x148] ss:$20 sps:$4 sm:$0xff]  }
  0x16   :  { %v2019_v62 = vld [vmem:[%s2654_s1 + $0x14c] ss:$20 sps:$4 sm:$0xff]   ;;  %v2091_v2 = vmov 0.0   ;;  %v2380_v3 = vld [vmem:[%s2656_s3 + $0x18] sm:$0xff]   ;;  %v2385_v4 = vld [vmem:[%s2656_s3 + $0x10] sm:$0xff]   ;;  %v2396_v7 = vshrl.u32 %v151_v5, 7 }
  0x17   :  { %613 = vmatpush1.bf16.msra.mxu0 %v1961_v22  ;;  %656 = vmatpush1.bf16.msra.mxu1 %v1962_v23  ;;  %v2021_v63 = vld [vmem:[%s2654_s1 + $0x140] ss:$20 sps:$4 sm:$0xff]   ;;  %v2394_v6 = vld [vmem:[%s2656_s3 + $0x8] sm:$0xff]  }
  0x18   :  { %614 = vmatprep.subr.bf16.mxu0 %v1963_v24  ;;  %657 = vmatprep.subr.bf16.mxu1 %v1965_v25  ;;  %v2372_v1 = vld [vmem:[%s2655_s0] ss:$8 sps:$4 sm:$0xff]   ;;  %v153_v9 = vsub.s32 0, %v2396_v7  ;;  %v161_v11 = vsub.s32 2, %v2396_v7  ;;  %v157_v12 = vsub.s32 1, %v2396_v7  ;;  %v165_v23 = vsub.s32 3, %v2396_v7 }
  0x19   :  { %v2403_v8 = vld [vmem:[%s2656_s3] sm:$0xff]  }
  0x1a   :  { %v2409_v10 = vld [vmem:[%s2657_s2] sm:$0x1f]  ;;  %s2093_s2 = smov 64  }
  0x1b   :  { %615 = vmatpush1.bf16.msra.mxu0 %v1967_v26  ;;  %658 = vmatpush1.bf16.msra.mxu1 %v1968_v27  ;;  %v154_v13 = vrot.slane %v2409_v10, %v153_v9  ;;  %v162_v14 = vrot.slane %v2409_v10, %v161_v11  ;;  %v158_v15 = vrot.slane %v2409_v10, %v157_v12 }
  0x1c   :  { %616 = vmatprep.subr.bf16.mxu0 %v1969_v28  ;;  %659 = vmatprep.subr.bf16.mxu1 %v1971_v29 }
  0x1f   :  { %617 = vmatpush1.bf16.msra.mxu0 %v1973_v30  ;;  %660 = vmatpush1.bf16.msra.mxu1 %v1974_v31  ;;  %v166_v30 = vrot.slane %v2409_v10, %v165_v23 }
  0x20   :  { %618 = vmatprep.subr.bf16.mxu0 %v1975_v32  ;;  %661 = vmatprep.subr.bf16.mxu1 %v1977_v33 }
  0x23   :  { %619 = vmatpush2.bf16.msra.mxu0 %v1979_v34  ;;  %662 = vmatpush2.bf16.msra.mxu1 %v1980_v35 }
  0x24   :  { %620 = vmatprep.subr.bf16.mxu0 %v1981_v36  ;;  %663 = vmatprep.subr.bf16.mxu1 %v1983_v37 }
  0x27   :  { %621 = vmatpush2.bf16.msra.mxu0 %v1985_v38  ;;  %664 = vmatpush2.bf16.msra.mxu1 %v1986_v39 }
  0x28   :  { %622 = vmatprep.subr.bf16.mxu0 %v1987_v40  ;;  %665 = vmatprep.subr.bf16.mxu1 %v1989_v41 }
  0x2b   :  { %623 = vmatpush2.bf16.msra.mxu0 %v1991_v42  ;;  %666 = vmatpush2.bf16.msra.mxu1 %v1992_v43 }
  0x2c   :  { %624 = vmatprep.subr.bf16.mxu0 %v1993_v44  ;;  %667 = vmatprep.subr.bf16.mxu1 %v1995_v45 }
  0x2f   :  { %625 = vmatpush2.bf16.msra.mxu0 %v1997_v46  ;;  %668 = vmatpush2.bf16.msra.mxu1 %v1998_v47 }
  0x30   :  { %626 = vmatprep.subr.bf16.mxu0 %v1999_v48  ;;  %669 = vmatprep.subr.bf16.mxu1 %v2001_v50  ;;  %v2030_v50 = vld [vmem:[%s2654_s1 + $0x268] ss:$20 sps:$4 sm:$0xff]  }
  0x33   :  { %627 = vmatpush2.bf16.msra.mxu0 %v2003_v51  ;;  %670 = vmatpush2.bf16.msra.mxu1 %v2004_v52  ;;  %v2031_v51 = vld [vmem:[%s2654_s1 + $0x128] ss:$20 sps:$4 sm:$0xff]   ;;  %v2032_v52 = vld [vmem:[%s2654_s1 + $0x240] ss:$20 sps:$4 sm:$0xff]  }
  0x34   :  { %628 = vmatprep.subr.bf16.mxu0 %v2005_v53  ;;  %671 = vmatprep.subr.bf16.mxu1 %v2007_v54  ;;  %v2033_v53 = vld [vmem:[%s2654_s1 + $0x100] ss:$20 sps:$4 sm:$0xff]   ;;  %v2034_v54 = vld [vmem:[%s2654_s1 + $0x218] ss:$20 sps:$4 sm:$0xff]  }
  0x37   :  { %629 = vmatpush2.bf16.msra.mxu0 %v2009_v55  ;;  %672 = vmatpush2.bf16.msra.mxu1 %v2010_v56  ;;  %v2035_v55 = vld [vmem:[%s2654_s1 + $0xd8] ss:$20 sps:$4 sm:$0xff]   ;;  %v2036_v56 = vld [vmem:[%s2654_s1 + $0x1f0] ss:$20 sps:$4 sm:$0xff]  }
  0x38   :  { %630 = vmatprep.subr.bf16.mxu0 %v2011_v57  ;;  %673 = vmatprep.subr.bf16.mxu1 %v2013_v58  ;;  %v2037_v57 = vld [vmem:[%s2654_s1 + $0xb0] ss:$20 sps:$4 sm:$0xff]   ;;  %v2038_v58 = vld [vmem:[%s2654_s1 + $0x1c8] ss:$20 sps:$4 sm:$0xff]  }
  0x3b   :  { %631 = vmatpush2.bf16.msra.mxu0 %v2015_v59  ;;  %674 = vmatpush2.bf16.msra.mxu1 %v2016_v60  ;;  %v2039_v59 = vld [vmem:[%s2654_s1 + $0x88] ss:$20 sps:$4 sm:$0xff]   ;;  %v2040_v60 = vld [vmem:[%s2654_s1 + $0x1a0] ss:$20 sps:$4 sm:$0xff]  }
  0x3c   :  { %632 = vmatprep.subr.bf16.mxu0 %v2017_v61  ;;  %675 = vmatprep.subr.bf16.mxu1 %v2019_v62  ;;  %v2041_v61 = vld [vmem:[%s2654_s1 + $0x60] ss:$20 sps:$4 sm:$0xff]   ;;  %v2042_v62 = vld [vmem:[%s2654_s1 + $0x178] ss:$20 sps:$4 sm:$0xff]  }
  0x3f   :  { %633 = vmatpush2.bf16.msra.mxu0 %v2021_v63  ;;  %676 = vmatpush2.bf16.msra.mxu1 %v2022_v0  ;;  %v2043_v63 = vld [vmem:[%s2654_s1 + $0x38] ss:$20 sps:$4 sm:$0xff]   ;;  %v2044_v0 = vld [vmem:[%s2654_s1 + $0x150] ss:$20 sps:$4 sm:$0xff]  }
  0x40   :  { %1808 = vmatprep.subr.bf16.mxu1 %v2091_v2  ;;  %1739 = vmatprep.subr.bf16.mxu0 %v2030_v50 }
  0x42   :  { %635 = vmatmul.mubr.bf16.vlgmr.msra.gmra.mxu0 %v2372_v1  ;;  %678 = vmatmul.mubr.bf16.vlgmr.msra.gmra.mxu1 %v2372_v1 }
  0x43   :  { %720 = vmatprep.mubr.bf16.mxu0 %v2023_v49  ;;  %1809 = vmatpush3.bf16.msra.mxu1 %v2380_v3 }
  0x44   :  { %1810 = vmatprep.subr.bf16.mxu1 %v2091_v2  ;;  %1816 = vmatprep.mubr.msk.bf16.mxu1 %vm2092_vm0, %v2091_v2 }
  0x45   :  { %1740 = vmatpush3.bf16.msra.mxu0 %v2031_v51 }
  0x46   :  { %1741 = vmatprep.subr.bf16.mxu0 %v2032_v52 }
  0x47   :  { %1811 = vmatpush3.bf16.msra.mxu1 %v2385_v4 }
  0x48   :  { %1812 = vmatprep.subr.bf16.mxu1 %v2091_v2 }
  0x49   :  { %1742 = vmatpush3.bf16.msra.mxu0 %v2033_v53 }
  0x4a   :  { %1743 = vmatprep.subr.bf16.mxu0 %v2034_v54 }
  0x4b   :  { %1813 = vmatpush3.bf16.msra.mxu1 %v2394_v6 }
  0x4c   :  { %1814 = vmatprep.subr.bf16.mxu1 %v2091_v2 }
  0x4d   :  { %1744 = vmatpush3.bf16.msra.mxu0 %v2035_v55 }
  0x4e   :  { %1745 = vmatprep.subr.bf16.mxu0 %v2036_v56 }
  0x4f   :  { %1815 = vmatpush3.bf16.msra.mxu1 %v2403_v8 }
  0x50   :  { %1820 = vmatprep.subr.bf16.mxu1 %v2091_v2 }
  0x51   :  { %1746 = vmatpush3.bf16.msra.mxu0 %v2037_v57 }
  0x52   :  { %1747 = vmatprep.subr.bf16.mxu0 %v2038_v58 }
  0x55   :  { %1748 = vmatpush3.bf16.msra.mxu0 %v2039_v59 }
  0x56   :  { %1749 = vmatprep.subr.bf16.mxu0 %v2040_v60 }
  0x59   :  { %1750 = vmatpush3.bf16.msra.mxu0 %v2041_v61 }
  0x5a   :  { %1751 = vmatprep.subr.bf16.mxu0 %v2042_v62 }
  0x5d   :  { %1752 = vmatpush3.bf16.msra.mxu0 %v2043_v63 }
  0x5e   :  { %1753 = vmatprep.subr.bf16.mxu0 %v2044_v0 }
 0x102   :  { %v636_v16 = vpop.f32.mrf.mxu0  ;;  %v679_v17 = vpop.f32.mrf.mxu1 }
 0x103   :  { %v637_v18 = vadd.f32 %v636_v16, %v154_v13  ;;  %v680_v21 = vadd.f32 %v679_v17, %v162_v14 }
 0x104   :  { %v638_v19 = vpop.f32.mrf.mxu0  ;;  %v681_v20 = vpop.f32.mrf.mxu1 }
 0x105   :  { %v639_v22 = vadd.f32 %v638_v19, %v158_v15  ;;  %731 = vrot.lane.b32.xlu0 %v637_v18, %s2093_s2  ;;  %v919_v29 = vmul.f32 %v680_v21, %v637_v18  ;;  %v2422_v36 = vadd.f32 %v681_v20, %v166_v30 }
 0x106   :  { %v640_v24 = vpop.f32.mrf.mxu0  ;;  %v683_v25 = vpop.f32.mrf.mxu1 }
 0x107   :  { %v641_v26 = vadd.f32 %v640_v24, %v154_v13  ;;  %v684_v27 = vadd.f32 %v683_v25, %v162_v14  ;;  %866 = vrot.lane.b32.xlu1 %v639_v22, %s2093_s2  ;;  %v817_v33 = vmul.f32 %v639_v22, %v637_v18 }
 0x108   :  { %v642_v28 = vpop.f32.mrf.mxu0  ;;  %v685_v38 = vpop.f32.mrf.mxu1 }
 0x109   :  { %v920_v31 = vmul.f32 %v684_v27, %v641_v26  ;;  %v643_v32 = vadd.f32 %v642_v28, %v158_v15  ;;  %733 = vrot.lane.b32.xlu0 %v641_v26, %s2093_s2  ;;  %v2425_v39 = vadd.f32 %v685_v38, %v166_v30 }
 0x10b   :  { %v921_v34 = vpack.c.bf16 %v920_v31, %v919_v29  ;;  %v818_v35 = vmul.f32 %v643_v32, %v641_v26  ;;  %868 = vrot.lane.b32.xlu1 %v643_v32, %s2093_s2 }
 0x10d   :  { %v819_v37 = vpack.c.bf16 %v818_v35, %v817_v33  ;;  %1062 = vrot.lane.b32.xlu0 %v680_v21, %s2093_s2 }
 0x10f   :  { %1064 = vrot.lane.b32.xlu1 %v684_v27, %s2093_s2 }
 0x111   :  { %1170 = vrot.lane.b32.xlu0 %v2422_v36, %s2093_s2 }
 0x113   :  { %1172 = vrot.lane.b32.xlu1 %v2425_v39, %s2093_s2 }
 0x177   :  { %v732_v40 = vpop.permute.xlu0 %731 }
 0x178   :  { %v737_v42 = vmul.f32 %v732_v40, %v637_v18 }
 0x179   :  { %v867_v45 = vpop.permute.xlu1 %866 }
 0x17a   :  { %v872_v48 = vmul.f32 %v867_v45, %v637_v18 }
 0x17b   :  { %v734_v41 = vpop.permute.xlu0 %733 }
 0x17c   :  { %v738_v43 = vmul.f32 %v734_v41, %v641_v26 }
 0x17d   :  { %v869_v46 = vpop.permute.xlu1 %868 }
 0x17e   :  { %v739_v44 = vpack.c.bf16 %v738_v43, %v737_v42  ;;  %v873_v47 = vmul.f32 %v869_v46, %v641_v26 }
 0x180   :  { %1817 = vmatmul.mubr.msk.bf16.vlgmr.msra.gmra.mxu1 %vm772_vm1, %v739_v44  ;;  %v874_v49 = vpack.c.bf16 %v873_v47, %v872_v48 }
 0x181   :  { %1821 = vmatpush3.bf16.msra.mxu1 %v2380_v3  ;;  %1828 = vmatprep.mubr.msk.bf16.mxu1 %vm2092_vm0, %v2091_v2 }
 0x182   :  { %1822 = vmatprep.subr.bf16.mxu1 %v2091_v2 }
 0x185   :  { %1823 = vmatpush3.bf16.msra.mxu1 %v2385_v4 }
 0x186   :  { %1824 = vmatprep.subr.bf16.mxu1 %v2091_v2 }
 0x189   :  { %1825 = vmatpush3.bf16.msra.mxu1 %v2394_v6 }
 0x18a   :  { %1826 = vmatprep.subr.bf16.mxu1 %v2091_v2 }
 0x18d   :  { %1827 = vmatpush3.bf16.msra.mxu1 %v2403_v8 }
 0x18e   :  { %1832 = vmatprep.subr.bf16.mxu1 %v2091_v2 }
 0x190   :  { %1829 = vmatmul.mubr.msk.bf16.vlgmr.msra.gmra.mxu1 %vm772_vm1, %v819_v37 }
 0x191   :  { %1833 = vmatpush3.bf16.msra.mxu1 %v2380_v3  ;;  %1840 = vmatprep.mubr.msk.bf16.mxu1 %vm2092_vm0, %v2091_v2 }
 0x192   :  { %1834 = vmatprep.subr.bf16.mxu1 %v2091_v2 }
 0x195   :  { %1835 = vmatpush3.bf16.msra.mxu1 %v2385_v4 }
 0x196   :  { %1836 = vmatprep.subr.bf16.mxu1 %v2091_v2 }
 0x199   :  { %1837 = vmatpush3.bf16.msra.mxu1 %v2394_v6 }
 0x19a   :  { %1838 = vmatprep.subr.bf16.mxu1 %v2091_v2 }
 0x19d   :  { %1839 = vmatpush3.bf16.msra.mxu1 %v2403_v8 }
 0x19e   :  { %1844 = vmatprep.subr.bf16.mxu1 %v2091_v2 }
 0x1a0   :  { %1841 = vmatmul.mubr.msk.bf16.vlgmr.msra.gmra.mxu1 %vm772_vm1, %v874_v49 }
 0x1a1   :  { %1845 = vmatpush3.bf16.msra.mxu1 %v2380_v3  ;;  %1852 = vmatprep.mubr.msk.bf16.mxu1 %vm2092_vm0, %v2091_v2  ;;  %v2045_v3 = vld [vmem:[%s2654_s1 + $0x10] ss:$20 sps:$4 sm:$0xff]  }
 0x1a2   :  { %1846 = vmatprep.subr.bf16.mxu1 %v2091_v2  ;;  %1754 = vmatpush3.bf16.msra.mxu0 %v2045_v3 }
 0x1a3   :  { %1856 = vmatprep.subr.bf16.mxu0 %v2091_v2 }
 0x1a5   :  { %1847 = vmatpush3.bf16.msra.mxu1 %v2385_v4  ;;  %v2515_v4 = vld [vmem:[%s2658_s4] sm:$0xff]   ;;  %721 = vmatmul.mubr.bf16.vlgmr.msra.gmra.mxu0 %v2372_v1 }
 0x1a6   :  { %1848 = vmatprep.subr.bf16.mxu1 %v2091_v2  ;;  %1857 = vmatpush3.bf16.msra.mxu0 %v2515_v4 }
 0x1a7   :  { %1858 = vmatprep.mubr.msk.bf16.mxu0 %vm2092_vm0, %v2091_v2  ;;  %1868 = vmatprep.subr.bf16.mxu0 %v2091_v2 }
 0x1a9   :  { %1849 = vmatpush3.bf16.msra.mxu1 %v2394_v6 }
 0x1aa   :  { %1850 = vmatprep.subr.bf16.mxu1 %v2091_v2 }
 0x1ad   :  { %1851 = vmatpush3.bf16.msra.mxu1 %v2403_v8 }
 0x1ae   :  { %1862 = vmatprep.subr.bf16.mxu1 %v2091_v2 }
 0x1b0   :  { %1853 = vmatmul.mubr.msk.bf16.vlgmr.msra.gmra.mxu1 %vm772_vm1, %v921_v34 }
 0x1b1   :  { %1864 = vmatprep.mubr.msk.bf16.mxu1 %vm2092_vm0, %v2091_v2  ;;  %1863 = vmatpush3.bf16.msra.mxu1 %v2515_v4 }
 0x1b2   :  { %1874 = vmatprep.subr.bf16.mxu1 %v2091_v2 }
 0x240   :  { %v810_v5 = vpop.f32.mrf.mxu1 }
 0x242   :  { %v1818_v6 = vpop.f32.mrf.mxu1 }
 0x244   :  { %v813_v8 = vpop.f32.mrf.mxu1 }
 0x246   :  { %v1819_v9 = vpop.f32.mrf.mxu1 }
 0x250   :  { %v857_v11 = vpop.f32.mrf.mxu1 }
 0x251   :  { %v966_v1 = vmax.f32 %v810_v5, %v857_v11 }
 0x252   :  { %v1830_v12 = vpop.f32.mrf.mxu1 }
 0x254   :  { %v860_v13 = vpop.f32.mrf.mxu1 }
 0x255   :  { %v967_v20 = vmax.f32 %v813_v8, %v860_v13 }
 0x256   :  { %v1831_v14 = vpop.f32.mrf.mxu1 }
 0x260   :  { %v912_v15 = vpop.f32.mrf.mxu1 }
 0x261   :  { %v968_v19 = vmax.f32 %v966_v1, %v912_v15 }
 0x262   :  { %v1842_v16 = vpop.f32.mrf.mxu1 }
 0x263   :  { %v2049_v16 = vld [vmem:[%s2659_s5 + $0x8] sm:$0xff]  }
 0x264   :  { %v915_v17 = vpop.f32.mrf.mxu1 }
 0x265   :  { %v969_v23 = vmax.f32 %v967_v20, %v915_v17 }
 0x266   :  { %v1843_v18 = vpop.f32.mrf.mxu1 }
 0x267   :  { %v1755_v18 = vpop.f32.mrf.mxu0 }
 0x269   :  { %v1756_v1 = vpop.f32.mrf.mxu0 }
 0x270   :  { %v959_v21 = vpop.f32.mrf.mxu1 }
 0x271   :  { %v970_v22 = vmax.f32 %v968_v19, %v959_v21  ;;  %v1758_v19 = vpop.f32.mrf.mxu0 }
 0x272   :  { %v1854_v24 = vpop.f32.mrf.mxu1 }
 0x273   :  { %v972_v25 = vsub.f32 %v810_v5, %v970_v22  ;;  %v978_v26 = vsub.f32 %v857_v11, %v970_v22  ;;  %v984_v27 = vsub.f32 %v912_v15, %v970_v22  ;;  %v990_v28 = vsub.f32 %v959_v21, %v970_v22  ;;  %v2048_v15 = vld [vmem:[%s2659_s5 + $0x10] sm:$0xff]   ;;  %v1759_v20 = vpop.f32.mrf.mxu0 }
 0x274   :  { %v962_v29 = vpop.f32.mrf.mxu1 }
 0x275   :  { %v974_v30 = vmul.f32 1.442695, %v972_v25  ;;  %v980_v31 = vmul.f32 1.442695, %v978_v26  ;;  %v986_v32 = vmul.f32 1.442695, %v984_v27  ;;  %v971_v33 = vmax.f32 %v969_v23, %v962_v29  ;;  %v1063_v23 = vpop.permute.xlu0 %1062 }
 0x276   :  { %v992_v34 = vmul.f32 1.442695, %v990_v28  ;;  %v1855_v35 = vpop.f32.mrf.mxu1  ;;  %v169_v28 = vsub.s32 4, %v2396_v7 }
 0x277   :  { %2063 = vpow2.f32 %v974_v30  ;;  %v973_v37 = vsub.f32 %v813_v8, %v971_v33  ;;  %v979_v38 = vsub.f32 %v860_v13, %v971_v33  ;;  %v985_v40 = vsub.f32 %v915_v17, %v971_v33  ;;  %v2050_v17 = vld [vmem:[%s2659_s5] sm:$0xff]  }
 0x278   :  { %2065 = vpow2.f32 %v980_v31  ;;  %v991_v41 = vsub.f32 %v962_v29, %v971_v33  ;;  %v1065_v29 = vpop.permute.xlu1 %1064  ;;  %v1757_v35 = vadd.f32 %v1756_v1, %v1755_v18  ;;  %v2056_v18 = vld [vmem:[%s2662_s11 + $0x30] sm:$0xff]   ;;  %v2057_v1 = vld [vmem:[%s2662_s11 + $0x28] sm:$0xff]  }
 0x279   :  { %2067 = vpow2.f32 %v986_v32  ;;  %v976_v42 = vmul.f32 1.442695, %v973_v37  ;;  %v982_v43 = vmul.f32 1.442695, %v979_v38  ;;  %v988_v44 = vmul.f32 1.442695, %v985_v40  ;;  %v1171_v32 = vpop.permute.xlu0 %1170 }
 0x27a   :  { %2069 = vpow2.f32 %v992_v34  ;;  %v994_v45 = vmul.f32 1.442695, %v991_v41  ;;  %v170_v38 = vrot.slane %v2409_v10, %v169_v28  ;;  %v1760_v41 = vadd.f32 %v1759_v20, %v1758_v19  ;;  %v2058_v19 = vld [vmem:[%s2662_s11 + $0x20] sm:$0xff]   ;;  %v2059_v20 = vld [vmem:[%s2662_s11 + $0x18] sm:$0xff]  }
 0x27b   :  { %2071 = vpow2.f32 %v976_v42 }
 0x27c   :  { %2073 = vpow2.f32 %v982_v43  ;;  %v1173_v7 = vpop.permute.xlu1 %1172 }
 0x27d   :  { %2075 = vpow2.f32 %v988_v44 }
 0x27e   :  { %2077 = vpow2.f32 %v994_v45 }
 0x284   :  { %v2064_v46 = vpop.eup %2063 }
 0x285   :  { %v2066_v47 = vpop.eup %2065 }
 0x286   :  { %v2068_v48 = vpop.eup %2067  ;;  %v996_v49 = vadd.f32 %v2066_v47, %v2064_v46 }
 0x287   :  { %v2070_v50 = vpop.eup %2069 }
 0x288   :  { %v2072_v51 = vpop.eup %2071  ;;  %v998_v52 = vadd.f32 %v2068_v48, %v996_v49 }
 0x289   :  { %v2074_v53 = vpop.eup %2073 }
 0x28a   :  { %v1000_v54 = vadd.f32 %v2070_v50, %v998_v52  ;;  %v997_v55 = vadd.f32 %v2074_v53, %v2072_v51  ;;  %v2076_v56 = vpop.eup %2075 }
 0x28b   :  { %v2078_v58 = vpop.eup %2077 }
 0x28c   :  { %v999_v57 = vadd.f32 %v2076_v56, %v997_v55  ;;  %2079 = vrcp.f32 %v1000_v54 }
 0x28e   :  { %v1001_v59 = vadd.f32 %v2078_v58, %v999_v57 }
 0x290   :  { %2081 = vrcp.f32 %v1001_v59 }
 0x299   :  { %v2080_v60 = vpop.eup %2079 }
 0x29a   :  { %v1004_v62 = vmul.f32 %v2080_v60, %v2064_v46  ;;  %v1070_v0 = vmul.f32 %v2080_v60, %v2066_v47  ;;  %v1121_v11 = vmul.f32 %v2080_v60, %v2068_v48  ;;  %v1180_v12 = vmul.f32 %v2080_v60, %v2070_v50  ;;  %v1714_v60 = vld [vmem:[%s2660_s6] ss:$0 sm:$0xff] }
 0x29b   :  { %v723_v48 = vadd.f32 %v1757_v35, %v170_v38 }
 0x29d   :  { %v2082_v61 = vpop.eup %2081 }
 0x29e   :  { %v1005_v63 = vmul.f32 %v2082_v61, %v2072_v51  ;;  %v1071_v3 = vmul.f32 %v2082_v61, %v2074_v53  ;;  %v1122_v8 = vmul.f32 %v2082_v61, %v2076_v56  ;;  %v1181_v9 = vmul.f32 %v2082_v61, %v2078_v58 }
 0x29f   :  { %v726_v53 = vadd.f32 %v1760_v41, %v170_v38 }
 0x2a0   :  { %v1006_v5 = vpack.c.bf16 %v1005_v63, %v1004_v62  ;;  %v1072_v6 = vpack.c.bf16 %v1071_v3, %v1070_v0  ;;  %v1123_v13 = vpack.c.bf16 %v1122_v8, %v1121_v11  ;;  %v1182_v14 = vpack.c.bf16 %v1181_v9, %v1180_v12 }
 0x2a2   :  { %1859 = vmatmul.mubr.msk.bf16.vlgmr.msra.gmra.mxu0 %vm1015_vm2, %v1006_v5  ;;  %1865 = vmatmul.mubr.msk.bf16.vlgmr.msra.gmra.mxu1 %vm1015_vm2, %v1072_v6 }
 0x2a3   :  { %1869 = vmatpush3.bf16.msra.mxu0 %v2515_v4  ;;  %1875 = vmatpush3.bf16.msra.mxu1 %v2515_v4  ;;  %v2047_v4 = vld [vmem:[%s2659_s5 + $0x18] sm:$0xff]  }
 0x2a4   :  { %1870 = vmatprep.mubr.msk.bf16.mxu0 %vm2092_vm0, %v2091_v2  ;;  %1876 = vmatprep.mubr.msk.bf16.mxu1 %vm2092_vm0, %v2091_v2 }
 0x2a5   :  { %1880 = vmatprep.subr.bf16.mxu0 %v2091_v2  ;;  %1892 = vmatprep.subr.bf16.mxu1 %v2091_v2 }
 0x2aa   :  { %1871 = vmatmul.mubr.msk.bf16.vlgmr.msra.gmra.mxu0 %vm1015_vm2, %v1123_v13  ;;  %1877 = vmatmul.mubr.msk.bf16.vlgmr.msra.gmra.mxu1 %vm1015_vm2, %v1182_v14  ;;  %v2051_v14 = vld [vmem:[%s2661_s9 + $0x18] sm:$0xff]  }
 0x2ab   :  { %1888 = vmatprep.mubr.msk.bf16.mxu0 %vm2092_vm0, %v2091_v2  ;;  %1900 = vmatprep.mubr.msk.bf16.mxu1 %vm2092_vm0, %v2091_v2 }
 0x2ac   :  { %1881 = vmatpush3.bf16.msra.mxu0 %v2047_v4  ;;  %1893 = vmatpush3.bf16.msra.mxu1 %v2051_v14  ;;  %v2052_v4 = vld [vmem:[%s2661_s9 + $0x10] sm:$0xff]  }
 0x2ad   :  { %1882 = vmatprep.subr.bf16.mxu0 %v2091_v2  ;;  %1894 = vmatprep.subr.bf16.mxu1 %v2091_v2 }
 0x2b0   :  { %1883 = vmatpush3.bf16.msra.mxu0 %v2048_v15  ;;  %1895 = vmatpush3.bf16.msra.mxu1 %v2052_v4  ;;  %v2053_v15 = vld [vmem:[%s2661_s9 + $0x8] sm:$0xff]  }
 0x2b1   :  { %1884 = vmatprep.subr.bf16.mxu0 %v2091_v2  ;;  %1896 = vmatprep.subr.bf16.mxu1 %v2091_v2 }
 0x2b4   :  { %1885 = vmatpush3.bf16.msra.mxu0 %v2049_v16  ;;  %1897 = vmatpush3.bf16.msra.mxu1 %v2053_v15  ;;  %v2054_v16 = vld [vmem:[%s2661_s9] sm:$0xff]  }
 0x2b5   :  { %1886 = vmatprep.subr.bf16.mxu0 %v2091_v2  ;;  %1898 = vmatprep.subr.bf16.mxu1 %v2091_v2 }
 0x2b8   :  { %1887 = vmatpush3.bf16.msra.mxu0 %v2050_v17  ;;  %1899 = vmatpush3.bf16.msra.mxu1 %v2054_v16  ;;  %v2055_v17 = vld [vmem:[%s2662_s11 + $0x38] sm:$0xff]  }
 0x2b9   :  { %1904 = vmatprep.subr.bf16.mxu0 %v2091_v2 }
 0x362   :  { %v1053_v21 = vpop.f32.mrf.mxu0  ;;  %v1110_v22 = vpop.f32.mrf.mxu1 }
 0x363   :  { %v1068_v33 = vmul.f32 %v1063_v23, %v1053_v21  ;;  %v1117_v34 = vmul.f32 %v1110_v22, %v2422_v36 }
 0x364   :  { %v1860_v24 = vpop.f32.mrf.mxu0  ;;  %v1866_v25 = vpop.f32.mrf.mxu1 }
 0x365   :  { %v1119_v47 = vadd.f32 %v1117_v34, %v1068_v33 }
 0x366   :  { %v1056_v26 = vpop.f32.mrf.mxu0  ;;  %v1113_v27 = vpop.f32.mrf.mxu1 }
 0x367   :  { %v1069_v42 = vmul.f32 %v1065_v29, %v1056_v26  ;;  %v1118_v43 = vmul.f32 %v1113_v27, %v2425_v39 }
 0x368   :  { %v1861_v30 = vpop.f32.mrf.mxu0  ;;  %v1867_v31 = vpop.f32.mrf.mxu1 }
 0x369   :  { %v1120_v51 = vadd.f32 %v1118_v43, %v1069_v42 }
 0x36a   :  { %v1161_v37 = vpop.f32.mrf.mxu0  ;;  %v1220_v40 = vpop.f32.mrf.mxu1 }
 0x36b   :  { %v1176_v44 = vmul.f32 %v1171_v32, %v1161_v37  ;;  %v1227_v10 = vmul.f32 %v1220_v40, %v723_v48  ;;  %v1720_v40 = vld [vmem:[%s2663_s7] ss:$0 sm:$0xff] }
 0x36c   :  { %v1872_v45 = vpop.f32.mrf.mxu0  ;;  %v1878_v46 = vpop.f32.mrf.mxu1 }
 0x36d   :  { %v1178_v52 = vadd.f32 %v1176_v44, %v1119_v47  ;;  %v1721_v45 = vld [vmem:[%s2664_s8] ss:$0 sm:$0xff] }
 0x36e   :  { %v1164_v49 = vpop.f32.mrf.mxu0  ;;  %v1223_v50 = vpop.f32.mrf.mxu1 }
 0x36f   :  { %v1177_v36 = vmul.f32 %v1173_v7, %v1164_v49  ;;  %v1228_v57 = vmul.f32 %v1223_v50, %v726_v53  ;;  %v1229_v58 = vadd.f32 %v1227_v10, %v1178_v52  ;;  %v2060_v49 = vld [vmem:[%s2662_s11 + $0x10] sm:$0xff]   ;;  %v2061_v50 = vld [vmem:[%s2662_s11 + $0x8] sm:$0xff]   ;;  %v1722_v52 = vld [vmem:[%s2665_s10] ss:$0 sm:$0xff] }
 0x370   :  { %v1873_v54 = vpop.f32.mrf.mxu0  ;;  %v1879_v55 = vpop.f32.mrf.mxu1 }
 0x371   :  { %v1179_v56 = vadd.f32 %v1177_v36, %v1120_v51  ;;  %v2062_v51 = vld [vmem:[%s2662_s11] sm:$0xff]  }
 0x373   :  { %v1230_v59 = vadd.f32 %v1228_v57, %v1179_v56 }
 0x375   :  { %v1231_v39 = vpack.c.bf16 %v1230_v59, %v1229_v58 }
 0x377   :  { %1889 = vmatmul.mubr.msk.bf16.vlgmr.msra.gmra.mxu0 %vm772_vm1, %v1231_v39 }
 0x378   :  { %1920 = vmatprep.mubr.msk.bf16.mxu0 %vm2092_vm0, %v2091_v2  ;;  %1905 = vmatpush3.bf16.msra.mxu0 %v2055_v17 }
 0x379   :  { %1906 = vmatprep.subr.bf16.mxu0 %v2091_v2 }
 0x37c   :  { %1907 = vmatpush3.bf16.msra.mxu0 %v2056_v18 }
 0x37d   :  { %1908 = vmatprep.subr.bf16.mxu0 %v2091_v2 }
 0x380   :  { %1909 = vmatpush3.bf16.msra.mxu0 %v2057_v1 }
 0x381   :  { %1910 = vmatprep.subr.bf16.mxu0 %v2091_v2 }
 0x384   :  { %1911 = vmatpush3.bf16.msra.mxu0 %v2058_v19 }
 0x385   :  { %1912 = vmatprep.subr.bf16.mxu0 %v2091_v2 }
 0x388   :  { %1913 = vmatpush3.bf16.msra.mxu0 %v2059_v20 }
 0x389   :  { %1914 = vmatprep.subr.bf16.mxu0 %v2091_v2 }
 0x38c   :  { %1915 = vmatpush3.bf16.msra.mxu0 %v2060_v49 }
 0x38d   :  { %1916 = vmatprep.subr.bf16.mxu0 %v2091_v2 }
 0x390   :  { %1917 = vmatpush3.bf16.msra.mxu0 %v2061_v50 }
 0x391   :  { %1918 = vmatprep.subr.bf16.mxu0 %v2091_v2  ;;  %v1728_v2 = vld [vmem:[%s2666_s12] ss:$0 sm:$0xff] }
 0x394   :  { %1919 = vmatpush3.bf16.msra.mxu0 %v2062_v51 }
 0x437   :  { %v1308_v61 = vpop.f32.mrf.mxu0 }
 0x438   :  { %v2567_v62 = vadd.f32 %v1714_v60, %v1308_v61 }
 0x439   :  { %v1890_v63 = vpop.f32.mrf.mxu0 }
 0x43a   :  { %v1315_v0 = vsel %vm772_vm1, %v2567_v62, 0.0  ;;  %v1324_v3 = vmul.f32 %v2567_v62, %v2567_v62 }
 0x43b   :  { %1316 = vadd.xlane.f32.xlu0 %v1315_v0  ;;  %v1311_v5 = vpop.f32.mrf.mxu0 }
 0x43c   :  { %v1312_v6 = vadd.f32 %v1714_v60, %v1311_v5  ;;  %v1326_v9 = vsel %vm772_vm1, %v1324_v3, 0.0 }
 0x43d   :  { %v1891_v8 = vpop.f32.mrf.mxu0 }
 0x43e   :  { %v1318_v11 = vsel %vm772_vm1, %v1312_v6, 0.0  ;;  %v1325_v12 = vmul.f32 %v1312_v6, %v1312_v6 }
 0x43f   :  { %1327 = vadd.xlane.f32.xlu0 %v1326_v9  ;;  %1319 = vadd.xlane.f32.xlu1 %v1318_v11 }
 0x440   :  { %v1329_v13 = vsel %vm772_vm1, %v1325_v12, 0.0 }
 0x443   :  { %1330 = vadd.xlane.f32.xlu0 %v1329_v13 }
 0x4c4   :  { %v1317_v21 = vpop.xlane.xlu0 %1316 }
 0x4c5   :  { %v1322_v22 = vmul.f32 0.015625, %v1317_v21 }
 0x4c7   :  { %v1336_v25 = vmul.f32 %v1322_v22, %v1322_v22  ;;  %v1334_v35 = vsub.f32 %v2567_v62, %v1322_v22 }
 0x4c8   :  { %v1328_v23 = vpop.xlane.xlu0 %1327  ;;  %v1320_v24 = vpop.xlane.xlu1 %1319 }
 0x4c9   :  { %v1332_v26 = vmul.f32 0.015625, %v1328_v23  ;;  %v1323_v27 = vmul.f32 0.015625, %v1320_v24 }
 0x4cb   :  { %v1338_v28 = vsub.f32 %v1332_v26, %v1336_v25  ;;  %v1337_v31 = vmul.f32 %v1323_v27, %v1323_v27  ;;  %v1335_v41 = vsub.f32 %v1312_v6, %v1323_v27 }
 0x4cc   :  { %v1331_v29 = vpop.xlane.xlu0 %1330 }
 0x4cd   :  { %v1340_v30 = vadd.f32 1e-05, %v1338_v28  ;;  %v1333_v32 = vmul.f32 0.015625, %v1331_v29  ;;  %v1737_v28 = vld [vmem:[%s2667_s13] ss:$0 sm:$0xff] }
 0x4cf   :  { %2083 = vrsqrt.f32 %v1340_v30  ;;  %v1339_v33 = vsub.f32 %v1333_v32, %v1337_v31  ;;  %v1738_v30 = vld [vmem:[%s2668_s14] ss:$0 sm:$0xff] }
 0x4d1   :  { %v1341_v34 = vadd.f32 1e-05, %v1339_v33 }
 0x4d3   :  { %2085 = vrsqrt.f32 %v1341_v34 }
 0x4dc   :  { %v2084_v37 = vpop.eup %2083 }
 0x4dd   :  { %v1344_v38 = vmul.f32 %v2084_v37, %v1334_v35 }
 0x4df   :  { %v1353_v44 = vmul.f32 %v1720_v40, %v1344_v38 }
 0x4e0   :  { %v2086_v42 = vpop.eup %2085 }
 0x4e1   :  { %v1345_v43 = vmul.f32 %v2086_v42, %v1335_v41  ;;  %v1362_v7 = vadd.f32 %v1721_v45, %v1353_v44 }
 0x4e3   :  { %v1354_v46 = vmul.f32 %v1720_v40, %v1345_v43 }
 0x4e5   :  { %v1363_v47 = vadd.f32 %v1721_v45, %v1354_v46 }
 0x4e7   :  { %v1364_v48 = vpack.c.bf16 %v1363_v47, %v1362_v7 }
 0x4e9   :  { %1901 = vmatmul.mubr.msk.bf16.vlgmr.msra.gmra.mxu1 %vm772_vm1, %v1364_v48 }
 0x5a9   :  { %v1441_v36 = vpop.f32.mrf.mxu1 }
 0x5aa   :  { %v1442_v54 = vadd.f32 %v1722_v52, %v1441_v36 }
 0x5ab   :  { %v1902_v53 = vpop.f32.mrf.mxu1 }
 0x5ac   :  { %v1448_v57 = vmax.f32 %v1442_v54, 0.0 }
 0x5ad   :  { %v1444_v55 = vpop.f32.mrf.mxu1 }
 0x5ae   :  { %v1445_v10 = vadd.f32 %v1722_v52, %v1444_v55 }
 0x5af   :  { %v1903_v56 = vpop.f32.mrf.mxu1 }
 0x5b0   :  { %v1449_v58 = vmax.f32 %v1445_v10, 0.0 }
 0x5b2   :  { %v1450_v59 = vpack.c.bf16 %v1449_v58, %v1448_v57 }
 0x5b4   :  { %1921 = vmatmul.mubr.bf16.vlgmr.msra.gmra.mxu0 %v1450_v59 }
 0x674   :  { %v1556_v39 = vpop.f32.mrf.mxu0 }
 0x675   :  { %v1557_v60 = vadd.f32 %v1728_v2, %v1556_v39 }
 0x676   :  { %v1922_v61 = vpop.f32.mrf.mxu0 }
 0x677   :  { %v1563_v62 = vadd.f32 %v1557_v60, %v1362_v7 }
 0x678   :  { %v1559_v63 = vpop.f32.mrf.mxu0 }
 0x679   :  { %v1560_v0 = vadd.f32 %v1728_v2, %v1559_v63  ;;  %v1565_v3 = vsel %vm772_vm1, %v1563_v62, 0.0  ;;  %v1573_v5 = vmul.f32 %v1563_v62, %v1563_v62 }
 0x67a   :  { %1566 = vadd.xlane.f32.xlu1 %v1565_v3  ;;  %v1923_v6 = vpop.f32.mrf.mxu0 }
 0x67b   :  { %v1564_v8 = vadd.f32 %v1560_v0, %v1363_v47  ;;  %v1575_v9 = vsel %vm772_vm1, %v1573_v5, 0.0 }
 0x67d   :  { %v1568_v11 = vsel %vm772_vm1, %v1564_v8, 0.0  ;;  %v1574_v12 = vmul.f32 %v1564_v8, %v1564_v8 }
 0x67e   :  { %1576 = vadd.xlane.f32.xlu1 %v1575_v9  ;;  %1569 = vadd.xlane.f32.xlu0 %v1568_v11 }
 0x67f   :  { %v1578_v13 = vsel %vm772_vm1, %v1574_v12, 0.0 }
 0x682   :  { %1579 = vadd.xlane.f32.xlu0 %v1578_v13 }
 0x703   :  { %v1567_v14 = vpop.xlane.xlu1 %1566 }
 0x704   :  { %v1571_v4 = vmul.f32 0.015625, %v1567_v14 }
 0x706   :  { %v1585_v17 = vmul.f32 %v1571_v4, %v1571_v4  ;;  %v1583_v26 = vsub.f32 %v1563_v62, %v1571_v4 }
 0x707   :  { %v1577_v15 = vpop.xlane.xlu1 %1576  ;;  %v1570_v16 = vpop.xlane.xlu0 %1569 }
 0x708   :  { %v1581_v18 = vmul.f32 0.015625, %v1577_v15  ;;  %v1572_v1 = vmul.f32 0.015625, %v1570_v16 }
 0x70a   :  { %v1587_v19 = vsub.f32 %v1581_v18, %v1585_v17  ;;  %v1586_v22 = vmul.f32 %v1572_v1, %v1572_v1  ;;  %v1584_v32 = vsub.f32 %v1564_v8, %v1572_v1 }
 0x70b   :  { %v1580_v20 = vpop.xlane.xlu0 %1579 }
 0x70c   :  { %v1589_v21 = vadd.f32 1e-05, %v1587_v19  ;;  %v1582_v23 = vmul.f32 0.015625, %v1580_v20 }
 0x70e   :  { %2087 = vrsqrt.f32 %v1589_v21  ;;  %v1588_v24 = vsub.f32 %v1582_v23, %v1586_v22 }
 0x710   :  { %v1590_v25 = vadd.f32 1e-05, %v1588_v24 }
 0x712   :  { %2089 = vrsqrt.f32 %v1590_v25 }
 0x71b   :  { %v2088_v27 = vpop.eup %2087 }
 0x71c   :  { %v1593_v29 = vmul.f32 %v2088_v27, %v1583_v26 }
 0x71e   :  { %v1602_v31 = vmul.f32 %v1737_v28, %v1593_v29 }
 0x71f   :  { %v2090_v33 = vpop.eup %2089 }
 0x720   :  { %v1611_v34 = vadd.f32 %v1738_v30, %v1602_v31  ;;  %v1594_v35 = vmul.f32 %v2090_v33, %v1584_v32 }
 0x722   :  { %1613 = vst.msk [vmem:[%s2669_s15] sm:$0xff] %vm772_vm1, %v1611_v34  ;;  %v1603_v37 = vmul.f32 %v1737_v28, %v1594_v35 }
 0x724   :  { %v1612_v38 = vadd.f32 %v1738_v30, %v1603_v37 }
 0x726   :  { %1614 = vst.msk [vmem:[%s2669_s15 + $0x8] sm:$0xff] %vm772_vm1, %v1612_v38 }

</bundles_post_ra>
